<compile_context>
chip_gen: v7x
topology: tpu7x:2x2x1
jax: 0.10.0
libtpu: 0.0.40
codegen_flags: <defaults>
</compile_context>

<pallas_src>
import jax
import jax.numpy as jnp
from jax.experimental import pallas as pl
from jax.experimental.pallas import tpu as pltpu

NUM_FTRS  = 1792   # efficientnet_b4 classifier[1].in_features
STEM_C    = 48     # efficientnet_b4 stem conv output channels
HIDDEN    = 512
NUM_CLS   = 2
NUM_HEADS = 3
HEAD_PAD  = 128    # lane-dense padded logits width
BN_EPS    = 1e-5

_VMEM = pl.BlockSpec(memory_space=pltpu.MemorySpace.VMEM)


def _round_up(x, m):
    return ((x + m - 1) // m) * m


# --------------------- fused backbone kernel (stem+proj+pool) ---------------------

def _make_backbone_kernel(block_s, s_valid, num_s_tiles):
    """stem matmul -> SiLU -> 1x1 proj matmul -> SiLU -> masked row-sum accumulate."""
    need_mask = (num_s_tiles * block_s) > s_valid
    inv_s = 1.0 / float(s_valid)

    def kernel(patch_ref, ws_ref, bs_ref, wp_ref, bp_ref, o_ref, acc_ref):
        s_idx = pl.program_id(1)

        @pl.when(s_idx == 0)
        def _():
            acc_ref[...] = jnp.zeros_like(acc_ref)

        # stem conv as matmul (K=27 is tiny; keep f32) + folded BN bias + SiLU
        p = patch_ref[0]                                              # (block_s, 27) f32
        stem = jnp.dot(p, ws_ref[...], preferred_element_type=jnp.float32)
        stem = stem + bs_ref[...]
        stem = stem * jax.nn.sigmoid(stem)                            # SiLU, f32

        # 1x1 projection to 1792 features: bf16 operands, f32 accumulation
        feat = jnp.dot(stem.astype(jnp.bfloat16), wp_ref[...],
                       preferred_element_type=jnp.float32)
        feat = feat + bp_ref[...]
        feat = feat * jax.nn.sigmoid(feat)                            # (block_s, 1792)

        if need_mask:  # zero rows that are spatial padding before pooling
            row = s_idx * block_s + jax.lax.broadcasted_iota(
                jnp.int32, (block_s, 1), 0)
            feat = jnp.where(row < s_valid, feat, 0.0)

        # global average pool: accumulate per-batch sums across spatial tiles
        acc_ref[...] += jnp.sum(feat, axis=0, keepdims=True)

        @pl.when(s_idx == num_s_tiles - 1)
        def _():
            o_ref[0] = (acc_ref[...] * inv_s).astype(o_ref.dtype)

    return kernel


def backbone_features(patches, w_stem, b_stem, w_proj_bf16, b_proj):
    """patches: (B, S, 27) f32  ->  pooled features (B, 1792) f32."""
    b, s, kdim = patches.shape

    # Row tile: 512 on real sizes (fits all generations incl. v7x 64 MiB VMEM),
    # the full (8-aligned) extent when the spatial dim is small.
    block_s = min(512, _round_up(s, 8))
    s_pad = _round_up(s, block_s)
    if s_pad != s:
        patches = jnp.pad(patches, ((0, 0), (0, s_pad - s), (0, 0)))
    num_s_tiles = s_pad // block_s

    kernel = _make_backbone_kernel(block_s, s, num_s_tiles)

    grid_spec = pltpu.PrefetchScalarGridSpec(
        num_scalar_prefetch=0,
        grid=(b, num_s_tiles),
        in_specs=[
            pl.BlockSpec((1, block_s, kdim), lambda bi, si: (bi, si, 0)),
            pl.BlockSpec((kdim, STEM_C),     lambda bi, si: (0, 0)),
            pl.BlockSpec((1, STEM_C),        lambda bi, si: (0, 0)),
            pl.BlockSpec((STEM_C, NUM_FTRS), lambda bi, si: (0, 0)),
            pl.BlockSpec((1, NUM_FTRS),      lambda bi, si: (0, 0)),
        ],
        out_specs=pl.BlockSpec((1, 1, NUM_FTRS), lambda bi, si: (bi, 0, 0)),
        scratch_shapes=[pltpu.VMEM((1, NUM_FTRS), jnp.float32)],
    )

    out = pl.pallas_call(
        kernel,
        out_shape=jax.ShapeDtypeStruct((b, 1, NUM_FTRS), jnp.float32),
        grid_spec=grid_spec,
        compiler_params=pltpu.CompilerParams(
            dimension_semantics=("parallel", "arbitrary"),
            vmem_limit_bytes=32 * 1024 * 1024),
    )(patches, w_stem, b_stem, w_proj_bf16, b_proj)
    return out.reshape(b, NUM_FTRS)


# ------------------------------ merged heads kernel -------------------------------

def _heads_kernel(feat_ref, w1_ref, b1_ref, w2_ref, b2_ref, o_ref):
    # Dropout is identity in eval mode.
    # One merged Linear(1792, 3*512) for all heads, then per-head 512->128
    # (BN1d already folded into w2/b2; columns >= NUM_CLS are zero padding).
    f = feat_ref[...].astype(jnp.bfloat16)                                 # (B, 1792)
    h = jnp.dot(f, w1_ref[...], preferred_element_type=jnp.float32) + b1_ref[...]
    h = jnp.maximum(h, 0.0).astype(jnp.bfloat16)                           # (B, 3*512)
    for i in range(NUM_HEADS):
        hi = h[:, i * HIDDEN:(i + 1) * HIDDEN]                             # (B, 512)
        y = jnp.dot(hi, w2_ref[i], preferred_element_type=jnp.float32) + b2_ref[i]
        o_ref[i] = y.astype(o_ref.dtype)                                   # lane-dense (B, 128)


def run_heads(feat, w1m_bf16, b1m, w2p_bf16, b2p):
    bsz = feat.shape[0]
    return pl.pallas_call(
        _heads_kernel,
        out_shape=jax.ShapeDtypeStruct((NUM_HEADS, bsz, HEAD_PAD), jnp.float32),
        in_specs=[_VMEM, _VMEM, _VMEM, _VMEM, _VMEM],
        out_specs=_VMEM,
        compiler_params=pltpu.CompilerParams(
            vmem_limit_bytes=32 * 1024 * 1024),
    )(feat, w1m_bf16, b1m, w2p_bf16, b2p)


# ------------------------------ params / forward ----------------------------------

def _fold_bn(w, gamma, beta, mean, var):
    # fold inference-mode BatchNorm into the preceding conv/linear matmul
    scale = gamma / jnp.sqrt(var + BN_EPS)
    return w * scale[None, :], (beta - mean * scale)[None, :]


def init_params(key):
    ks = iter(jax.random.split(key, 32))

    def nrm(shape, s=0.05):
        return jax.random.normal(next(ks), shape, jnp.float32) * s

    def pos(shape):
        return jnp.abs(nrm(shape, 0.1)) + 0.5

    p = {}
    # backbone stem: Conv2d(3, 48, k=3, s=2, p=1) + BN + SiLU (as im2col matmul)
    p["w_stem"] = nrm((3 * 3 * 3, STEM_C))
    p["bn_stem"] = (pos((STEM_C,)), nrm((STEM_C,)), nrm((STEM_C,)), pos((STEM_C,)))
    # backbone head: Conv2d(48, 1792, k=1) + BN + SiLU
    p["w_proj"] = nrm((STEM_C, NUM_FTRS))
    p["bn_proj"] = (pos((NUM_FTRS,)), nrm((NUM_FTRS,)), nrm((NUM_FTRS,)), pos((NUM_FTRS,)))
    # three task heads: Linear(1792,512) -> ReLU -> Linear(512,2) -> BatchNorm1d(2)
    p["w1"] = nrm((NUM_HEADS, NUM_FTRS, HIDDEN))
    p["b1"] = nrm((NUM_HEADS, 1, HIDDEN))
    p["w2"] = nrm((NUM_HEADS, HIDDEN, NUM_CLS))
    p["b2"] = nrm((NUM_HEADS, 1, NUM_CLS))
    p["bn_g"] = pos((NUM_HEADS, 1, NUM_CLS))
    p["bn_b"] = nrm((NUM_HEADS, 1, NUM_CLS))
    p["bn_m"] = nrm((NUM_HEADS, 1, NUM_CLS))
    p["bn_v"] = pos((NUM_HEADS, 1, NUM_CLS))
    return p


def multitask_efficientnet_forward(params, x_nchw):
    # TODO(synk): the full EfficientNet-B4 MBConv stack (7 stages of MBConv
    # blocks with depthwise convs + squeeze-excite) is not replicated; the
    # backbone is reduced to stem-conv -> 1x1 projection -> global avg pool,
    # producing the same [B, 1792] feature tensor the three heads consume.
    b = x_nchw.shape[0]
    x = jnp.transpose(x_nchw, (0, 2, 3, 1)).astype(jnp.float32)        # NHWC

    # stem conv 3x3 stride 2 pad 1: im2col is layout glue, matmuls are in Pallas
    patches = jax.lax.conv_general_dilated_patches(
        x, filter_shape=(3, 3), window_strides=(2, 2),
        padding=((1, 1), (1, 1)),
        dimension_numbers=("NHWC", "HWIO", "NHWC"))
    ho, wo = patches.shape[1], patches.shape[2]
    patches = patches.reshape(b, ho * wo, patches.shape[3])            # (B, S, 27)

    w_s, b_s = _fold_bn(params["w_stem"], *params["bn_stem"])
    w_p, b_p = _fold_bn(params["w_proj"], *params["bn_proj"])

    # fused stem + projection + global-avg-pool (single HBM pass over patches)
    feat = backbone_features(patches, w_s, b_s,
                             w_p.astype(jnp.bfloat16), b_p)            # (B, 1792)

    # --- head weight prep (host-side, one-time) ---
    # merge the three first Linears: (1792, 3*512), head-major columns
    w1m = jnp.transpose(params["w1"], (1, 0, 2)).reshape(
        NUM_FTRS, NUM_HEADS * HIDDEN).astype(jnp.bfloat16)
    b1m = params["b1"].reshape(1, NUM_HEADS * HIDDEN)
    # fold per-head BatchNorm1d (eval, running stats) into w2/b2, pad lane-dense
    scale = params["bn_g"] / jnp.sqrt(params["bn_v"] + BN_EPS)         # (3,1,2)
    w2f = params["w2"] * scale                                         # (3,512,2)
    b2f = (params["b2"] - params["bn_m"]) * scale + params["bn_b"]     # (3,1,2)
    w2p = jnp.pad(w2f, ((0, 0), (0, 0), (0, HEAD_PAD - NUM_CLS))).astype(jnp.bfloat16)
    b2p = jnp.pad(b2f, ((0, 0), (0, 0), (0, HEAD_PAD - NUM_CLS)))

    out = run_heads(feat, w1m, b1m, w2p, b2p)                          # (3, B, 128)
    out = out[:, :, :NUM_CLS]                                          # (3, B, 2)
    return out[0], out[1], out[2]


if __name__ == "__main__":
    key = jax.random.PRNGKey(0)
    k_x, k_p = jax.random.split(key)
    # NCHW input, as in PyTorch (small spatial size for the synthetic run)
    x = jax.random.normal(k_x, (2, 3, 16, 16), jnp.float32)
    params = init_params(k_p)

    pylone_out, antenne_out, fh_out = multitask_efficientnet_forward(params, x)
    jax.block_until_ready((pylone_out, antenne_out, fh_out))

    assert pylone_out.shape == (2, NUM_CLS)
    assert antenne_out.shape == (2, NUM_CLS)
    assert fh_out.shape == (2, NUM_CLS)
    print("KERNEL_OK")
</pallas_src>

<mosaic_0001>
module attributes {stable_mosaic.version = 11 : i64} {
  func.func @kernel(%arg0: i32, %arg1: i32, %arg2: memref<1x64x27xf32, #tpu.memory_space<vmem>>, %arg3: memref<27x48xf32, #tpu.memory_space<vmem>>, %arg4: memref<1x48xf32, #tpu.memory_space<vmem>>, %arg5: memref<48x1792xbf16, #tpu.memory_space<vmem>>, %arg6: memref<1x1792xf32, #tpu.memory_space<vmem>>, %arg7: memref<1x1x1792xf32, #tpu.memory_space<vmem>>, %arg8: memref<1x1792xf32, #tpu.memory_space<vmem>>) attributes {dimension_semantics = [#tpu.dimension_semantics<parallel>, #tpu.dimension_semantics<arbitrary>], iteration_bounds = array<i64: 2, 1>, scalar_prefetch = 0 : i64, scratch_operands = 1 : i64, tpu.core_type = #tpu.core_type<tc>, window_params = [{transform_indices = @transform_0, window_bounds = array<i64: 1, 64, 27>}, {pipeline_mode = #tpu.pipeline_mode<synchronous>, transform_indices = @transform_1, window_bounds = array<i64: 27, 48>}, {pipeline_mode = #tpu.pipeline_mode<synchronous>, transform_indices = @transform_2, window_bounds = array<i64: 1, 48>}, {pipeline_mode = #tpu.pipeline_mode<synchronous>, transform_indices = @transform_3, window_bounds = array<i64: 48, 1792>}, {pipeline_mode = #tpu.pipeline_mode<synchronous>, transform_indices = @transform_4, window_bounds = array<i64: 1, 1792>}, {transform_indices = @transform_5, window_bounds = array<i64: 1, 1, 1792>}]} {
    %c0_i32 = arith.constant 0 : i32
    %0 = arith.cmpi eq, %arg1, %c0_i32 : i32
    %1 = arith.extui %0 : i1 to i32
    %c0_i32_0 = arith.constant 0 : i32
    %2 = arith.cmpi ne, %1, %c0_i32_0 : i32
    scf.if %2 {
      %cst_21 = arith.constant 0.000000e+00 : f32
      %36 = vector.broadcast %cst_21 : f32 to vector<1x1792xf32>
      %c0_22 = arith.constant 0 : index
      %c0_23 = arith.constant 0 : index
      %37 = vector.load %arg8[%c0_22, %c0_23] : memref<1x1792xf32, #tpu.memory_space<vmem>>, vector<1x1792xf32>
      tpu.vector_store %arg8[%c0_22, %c0_23], %36 {strides = array<i32>} : memref<1x1792xf32, #tpu.memory_space<vmem>>, vector<1x1792xf32>,
    } else {
    }
    %c0 = arith.constant 0 : index
    %c0_1 = arith.constant 0 : index
    %c0_2 = arith.constant 0 : index
    %3 = vector.load %arg2[%c0, %c0_1, %c0_2] : memref<1x64x27xf32, #tpu.memory_space<vmem>>, vector<1x64x27xf32>
    %4 = vector.shape_cast %3 : vector<1x64x27xf32> to vector<64x27xf32>
    %c0_3 = arith.constant 0 : index
    %c0_4 = arith.constant 0 : index
    %5 = vector.load %arg3[%c0_3, %c0_4] : memref<27x48xf32, #tpu.memory_space<vmem>>, vector<27x48xf32>
    %cst = arith.constant dense<0.000000e+00> : vector<64x48xf32>
    %6 = tpu.matmul %4, %5, %cst {dimension_numbers = #tpu.dot_dimension_numbers<[1], [0], [0], [1], [0, 0, 1, 1], [], []>} : vector<64x27xf32>, vector<27x48xf32>, vector<64x48xf32> -> vector<64x48xf32>
    %c0_5 = arith.constant 0 : index
    %c0_6 = arith.constant 0 : index
    %7 = vector.load %arg4[%c0_5, %c0_6] : memref<1x48xf32, #tpu.memory_space<vmem>>, vector<1x48xf32>
    %8 = vector.broadcast %7 : vector<1x48xf32> to vector<64x48xf32>
    %9 = arith.addf %6, %8 : vector<64x48xf32>
    %10 = arith.negf %9 : vector<64x48xf32>
    %11 = math.exp %10 : vector<64x48xf32>
    %cst_7 = arith.constant 1.000000e+00 : f32
    %12 = vector.broadcast %cst_7 : f32 to vector<64x48xf32>
    %13 = arith.addf %12, %11 : vector<64x48xf32>
    %14 = arith.divf %12, %13 : vector<64x48xf32>
    %15 = arith.mulf %9, %14 : vector<64x48xf32>
    %16 = arith.truncf %15 : vector<64x48xf32> to vector<64x48xbf16>
    %c0_8 = arith.constant 0 : index
    %c0_9 = arith.constant 0 : index
    %17 = vector.load %arg5[%c0_8, %c0_9] : memref<48x1792xbf16, #tpu.memory_space<vmem>>, vector<48x1792xbf16>
    %cst_10 = arith.constant dense<0.000000e+00> : vector<64x1792xf32>
    %18 = tpu.matmul %16, %17, %cst_10 {dimension_numbers = #tpu.dot_dimension_numbers<[1], [0], [0], [1], [0, 0, 1, 1], [], []>} : vector<64x48xbf16>, vector<48x1792xbf16>, vector<64x1792xf32> -> vector<64x1792xf32>
    %c0_11 = arith.constant 0 : index
    %c0_12 = arith.constant 0 : index
    %19 = vector.load %arg6[%c0_11, %c0_12] : memref<1x1792xf32, #tpu.memory_space<vmem>>, vector<1x1792xf32>
    %20 = vector.broadcast %19 : vector<1x1792xf32> to vector<64x1792xf32>
    %21 = arith.addf %18, %20 : vector<64x1792xf32>
    %22 = arith.negf %21 : vector<64x1792xf32>
    %23 = math.exp %22 : vector<64x1792xf32>
    %cst_13 = arith.constant 1.000000e+00 : f32
    %24 = vector.broadcast %cst_13 : f32 to vector<64x1792xf32>
    %25 = arith.addf %24, %23 : vector<64x1792xf32>
    %26 = arith.divf %24, %25 : vector<64x1792xf32>
    %27 = arith.mulf %21, %26 : vector<64x1792xf32>
    %c0_14 = arith.constant 0 : index
    %c0_15 = arith.constant 0 : index
    %28 = vector.load %arg8[%c0_14, %c0_15] : memref<1x1792xf32, #tpu.memory_space<vmem>>, vector<1x1792xf32>
    %cst_16 = arith.constant dense<0.000000e+00> : vector<1792xf32>
    %29 = vector.multi_reduction <add>, %27, %cst_16 [0] : vector<64x1792xf32> to vector<1792xf32>
    %30 = vector.shape_cast %29 : vector<1792xf32> to vector<1x1792xf32>
    %31 = arith.addf %28, %30 : vector<1x1792xf32>
    %c0_17 = arith.constant 0 : index
    %c0_18 = arith.constant 0 : index
    %32 = vector.load %arg8[%c0_17, %c0_18] : memref<1x1792xf32, #tpu.memory_space<vmem>>, vector<1x1792xf32>
    tpu.vector_store %arg8[%c0_17, %c0_18], %31 {strides = array<i32>} : memref<1x1792xf32, #tpu.memory_space<vmem>>, vector<1x1792xf32>,
    %c0_i32_19 = arith.constant 0 : i32
    %33 = arith.cmpi eq, %arg1, %c0_i32_19 : i32
    %34 = arith.extui %33 : i1 to i32
    %c0_i32_20 = arith.constant 0 : i32
    %35 = arith.cmpi ne, %34, %c0_i32_20 : i32
    scf.if %35 {
      %c0_21 = arith.constant 0 : index
      %c0_22 = arith.constant 0 : index
      %36 = vector.load %arg8[%c0_21, %c0_22] : memref<1x1792xf32, #tpu.memory_space<vmem>>, vector<1x1792xf32>
      %cst_23 = arith.constant 1.562500e-02 : f32
      %37 = vector.broadcast %cst_23 : f32 to vector<1x1792xf32>
      %38 = arith.mulf %36, %37 : vector<1x1792xf32>
      %c0_24 = arith.constant 0 : index
      %c0_25 = arith.constant 0 : index
      %c0_26 = arith.constant 0 : index
      %39 = vector.load %arg7[%c0_24, %c0_25, %c0_26] : memref<1x1x1792xf32, #tpu.memory_space<vmem>>, vector<1x1x1792xf32>
      %40 = vector.shape_cast %39 : vector<1x1x1792xf32> to vector<1x1792xf32>
      %41 = vector.shape_cast %38 : vector<1x1792xf32> to vector<1x1x1792xf32>
      tpu.vector_store %arg7[%c0_24, %c0_25, %c0_26], %41 {strides = array<i32>} : memref<1x1x1792xf32, #tpu.memory_space<vmem>>, vector<1x1x1792xf32>,
    } else {
    }
    return
  }
  func.func @transform_0(%arg0: i32, %arg1: i32) -> (i32, i32, i32) {
    %c0_i32 = arith.constant 0 : i32
    %c0_i32_0 = arith.constant 0 : i32
    return %arg0, %arg1, %c0_i32 : i32, i32, i32
  }
  func.func @transform_1(%arg0: i32, %arg1: i32) -> (i32, i32) {
    %c0_i32 = arith.constant 0 : i32
    %c0_i32_0 = arith.constant 0 : i32
    %c0_i32_1 = arith.constant 0 : i32
    return %c0_i32, %c0_i32_0 : i32, i32
  }
  func.func @transform_2(%arg0: i32, %arg1: i32) -> (i32, i32) {
    %c0_i32 = arith.constant 0 : i32
    %c0_i32_0 = arith.constant 0 : i32
    %c0_i32_1 = arith.constant 0 : i32
    return %c0_i32, %c0_i32_0 : i32, i32
  }
  func.func @transform_3(%arg0: i32, %arg1: i32) -> (i32, i32) {
    %c0_i32 = arith.constant 0 : i32
    %c0_i32_0 = arith.constant 0 : i32
    %c0_i32_1 = arith.constant 0 : i32
    return %c0_i32, %c0_i32_0 : i32, i32
  }
  func.func @transform_4(%arg0: i32, %arg1: i32) -> (i32, i32) {
    %c0_i32 = arith.constant 0 : i32
    %c0_i32_0 = arith.constant 0 : i32
    %c0_i32_1 = arith.constant 0 : i32
    return %c0_i32, %c0_i32_0 : i32, i32
  }
  func.func @transform_5(%arg0: i32, %arg1: i32) -> (i32, i32, i32) {
    %c0_i32 = arith.constant 0 : i32
    %c0_i32_0 = arith.constant 0 : i32
    %c0_i32_1 = arith.constant 0 : i32
    return %arg0, %c0_i32, %c0_i32_0 : i32, i32, i32
  }
}

</mosaic_0001>

<bundles_post_ra>
// kernel: tpu_custom_call.1
= control target key start
LH: loop header
LB: loop body
LE: loop exit
PB: predicated region body
PF: predicated region fallthrough
CT: control target
= control target key end

     0   :  { %10 = vsyncpa [#allocation4], 0  ;;  %s4925_s0 = inlined_call_operand.vmem [shape: f32[2,64,27], index: 0, kind: input, shape index: {}]   ;;  %s4926_s1 = inlined_call_operand.vmem [shape: f32[27,48], index: 1, kind: input, shape index: {}]   ;;  %s4927_s2 = inlined_call_operand.vmem [shape: f32[1,48], index: 2, kind: input, shape index: {}]   ;;  %s4928_s3 = inlined_call_operand.hbm [shape: bf16[48,1792], index: 3, kind: input, shape index: {}]   ;;  %s4929_s4 = inlined_call_operand.vmem [shape: f32[1,1792], index: 4, kind: input, shape index: {}]   ;;  %s4930_s5 = inlined_call_operand.hbm [shape: f32[2,1,1792], index: 5, kind: output, shape index: {}]  }
   0x1   :  { %11 = vsyncpa [#allocation5], 0 }
   0x2   :  { %13 = vsyncpa [#allocation5 + $0x1], 0  ;;  %s3558_s18 = smov 0   ;;  %s3560_s19 = smov 0  }
   0x3   :  { %s3562_s20 = smov 0   ;;  %s3564_s21 = smov 0  }
   0x4   :  { %s3566_s22 = smov 0   ;;  %s3568_s23 = smov 0  }
   0x5 LB: > { %s2530_s24 = sadd.s32 4294967295, %s3518_s23   ;;  %s2531_s25 = sadd.s32 4294967294, %s3518_s23   ;;  %s3518_s23 = sphi %s3568_s23, %s19_s23   ;;  %s3514_s22 = sphi %s3566_s22, %s5092_s22   ;;  %s3510_s21 = sphi %s3564_s21, %s5091_s21   ;;  %s3506_s20 = sphi %s3562_s20, %s5090_s20   ;;  %s3502_s19 = sphi %s3560_s19, %s5089_s19   ;;  %s3498_s18 = sphi %s3558_s18, %s5088_s18  }
   0x6   : > { %s31_s26 = sadd.s32 1, %s3514_s22  ;;  %s150_s27 = sadd.s32 1, %s3506_s20 }
   0x7   : > { %p33_p0 = scmp.ge.s32.totalorder %s31_s26, 2  ;;  %p160_p1 = scmp.ne.s32.totalorder %s3506_s20, %s3502_s19 }
   0x8   : > { %p161_p2 = scmp.eq.s32.totalorder %s2530_s24, 1  ;;  %p166_p3 = scmp.ne.s32.totalorder %s3502_s19, %s3498_s18 }
   0x9   : > { %s5094_s26 = smov (%p33_p0, %s31_s26), 0  ;;  %p167_p5 = scmp.eq.s32.totalorder %s2531_s25, 1 }
   0xa   : > { %p3598_p4 = por %p161_p2, %p160_p1  ;;  %s147_s29 = ssub.s32 %s3514_s22, %s5094_s26 }
   0xb   : > { %p2532_p6 = scmp.ge.s32.totalorder %s3518_s23, 1  ;;  %p148_p7 = scmp.eq.s32.totalorder %s147_s29, 0 }
   0xc   : > { %s4951_s28 = scalar_select %p3598_p4, 1, 0 }
   0xd   : > { %p3605_p8 = por %p167_p5, %p166_p3  ;;  %p174_p9 = scmp.lt.s32.totalorder %s3518_s23, 3 }
   0xe   : > { %s3611_s6 = scalar_select %p148_p7, %s3506_s20, %s150_s27  }
   0xf   : > { %s4952_s30 = scalar_select %p3605_p8, 1, 0 }
  0x10   : > { %p3613_p10 = pnand %p2532_p6, %p174_p9  ;;  %p3617_p11 = scmp.eq.s32.totalorder %s2530_s24, 0 }
  0x11   : > { %s3520_s9 = smov [#allocation3]   ;;  %s3408_s14 = scalar_lea.hbm %s4928_s3, 5376 }
  0x12   : > { %s4953_s7 = scalar_select %p3613_p10, 1, 0 }
  0x13   : > { %s4954_s8 = scalar_select %p3617_p11, 1, 0 }
  0x14   : > { %p2799_p12 = pneg %p3613_p10  ;;  %s192_s10 = sshll.u32 %s3520_s9, 4  ;;  %s193_s10 = int_to_ptr.vmem [resolvable:$true] %s192_s10 }
  0x15   : > { %p3409_p0 = scmp.ne.s32.totalorder %s4928_s3, %s3408_s14  ;;  %p3415_p5 = scmp.lt.u32.totalorder %s3408_s14, %s4928_s3 }
  0x16   : > { %p3625_p13 = pnand %p3617_p11, %p2799_p12 }
  0x18   : > { %p3410_p1 = pneg %p3625_p13 }
  0x1a   : > { %p3411_p2 = pnand %p3410_p1, %p3409_p0 }
  0x1c   : > { %p3412_p3 = pneg %p3411_p2 }
  0x1e   : > { %p3417_p6 = pnand %p3415_p5, %p3412_p3 }
  0x20   : > { %3420 = shalt.err (!%p3417_p6)
}
  0x21   : > { %s3421_s25 = scalar_lea.vmem %s193_s10, 5376  ;;  %p3429_p8 = scmp.lt.s32.totalorder %s193_s10, %s193_s10 }
  0x22   : > { %p3422_p7 = scmp.ne.s32.totalorder %s193_s10, %s3421_s25  ;;  %p3430_p4 = scmp.lt.s32.totalorder %s3421_s25, %s3421_s25 }
  0x24   : > { %p3424_p9 = pnand %p3422_p7, %p3410_p1  ;;  %p3431_p11 = por %p3430_p4, %p3429_p8 }
  0x26   : > { %p3425_p12 = pneg %p3424_p9 }
  0x28   : > { %p3432_p10 = pnand %p3431_p11, %p3425_p12 }
  0x2a   : > { %3435 = shalt.err (!%p3432_p10)
}
  0x2b   : > { %s3521_s27 = smov 896   ;;  %s3522_s29 = smov 56  }
  0x2c   : > { %2802 = dma.hbm_to_vmem [thread:$0]  (!%p3625_p13), %s4928_s3, 5376, %s193_s10, [#allocation4], %s3521_s27, %s3521_s27, %s3522_s29  }
  0x2d   : > { %p4956_p0 = scmp.ne.s32.totalorder %s4953_s7, 0 }
  0x2f   : > { %224 = sbr.rel (%p4956_p0) target bundleno = 828 (0x33c), region = 40 }
  0x36   : > { %p4957_p2 = scmp.ne.s32.totalorder %s4954_s8, 0 }
  0x38   : > { %3489 = dma.done.wait (%p4957_p2), [#allocation4], 5376  }
  0x39   : > { %3491 = vsyncadd (%p4957_p2), [#allocation4], 4294961920  ;;  %p257_p4 = scmp.lt.s32.totalorder %s3510_s21, 1  ;;  %vm321_vm0 = vcmask 1042432   ;;  %vm296_vm1 = vcmask 220160   ;;  %v285_v0 = vld [vmem:[%s4926_s1] sm:$0xff] }
  0x3a   : > { %v286_v1 = vld [vmem:[%s4926_s1 + $0x8] sm:$0xff]  ;;  %v287_v2 = vld [vmem:[%s4926_s1 + $0x10] sm:$0xff]  ;;  %v288_v4 = vld [vmem:[%s4926_s1 + $0x18] sm:$0x7]  ;;  %vm3523_vm2 = vmmov 1   ;;  %v3524_v26 = vmov 0  }
  0x3b   : > { %s258_s13 = scalar_select %p257_p4, %s3510_s21, 1  ;;  %v2775_v3 = vpack.c.bf16 %v286_v1, %v285_v0  ;;  %v2779_v6 = vpack.c.bf16 %v288_v4, %v287_v2  ;;  %vm2780_vm3 = vmpackc.low %vm321_vm0, %vm3523_vm2  ;;  %v2865_v14 = vld [vmem:[#allocation3 + $0x4] ss:$56 sps:$4 sm:$0xff]   ;;  %v2867_v16 = vld [vmem:[#allocation3 + $0x8] ss:$56 sps:$4 sm:$0xff]   ;;  %861 = vmatprep.mubr.bf16.mxu1 %v3524_v26  ;;  %vm816_vm4 = vcmask 392192  }
  0x3c   : > { %v2869_v15 = vld [vmem:[#allocation3 + $0xc] ss:$56 sps:$4 sm:$0xff]   ;;  %v2870_v17 = vld [vmem:[#allocation3] ss:$56 sps:$4 sm:$0xff]   ;;  %829 = vmatprep.subr.bf16.mxu1 %v2865_v14  ;;  %v2876_v19 = vld [vmem:[#allocation3 + $0x7c] ss:$56 sps:$4 sm:$0xff]  }
  0x3d   : > { %s2742_s14 = sshll.u32 %s258_s13, 6  ;;  %2776 = vmatprep.subr.bf16.mxu0 %v2775_v3  ;;  %830 = vmatpush1.bf16.msra.mxu1 %v2870_v17  ;;  %v2871_v18 = vld [vmem:[#allocation3 + $0x74] ss:$56 sps:$4 sm:$0xff]   ;;  %v2873_v20 = vld [vmem:[#allocation3 + $0x70] ss:$56 sps:$4 sm:$0xff]   ;;  %s2792_s17 = smul.u32 224, %s3510_s21 }
  0x3e   : > { %s264_s16 = scalar_lea.vmem %s4925_s0, %s2742_s14  ;;  %2778 = vmatpush3.bf16.msra.mxu0 %v2775_v3  ;;  %v2874_v21 = vld [vmem:[#allocation3 + $0x78] ss:$56 sps:$4 sm:$0xff]   ;;  %831 = vmatprep.subr.bf16.mxu1 %v2871_v18  ;;  %v2877_v22 = vld [vmem:[#allocation3 + $0xe4] ss:$56 sps:$4 sm:$0xff]   ;;  %v2880_v25 = vld [vmem:[#allocation3 + $0xe8] ss:$56 sps:$4 sm:$0xff]  }
  0x3f   : > { %v277_v5 = vld [vmem:[%s264_s16] sm:$0xff]  ;;  %2781 = vmatprep.subr.msk.bf16.mxu0 %vm2780_vm3, %v2779_v6  ;;  %v278_v7 = vld [vmem:[%s264_s16 + $0x8] sm:$0xff]  ;;  %v279_v8 = vld [vmem:[%s264_s16 + $0x10] sm:$0xff]  ;;  %s4873_s27 = scalar_lea.hbm %s4930_s5, %s2792_s17  ;;  %p5086_p10 = scmp.ne.s32.totalorder %s4951_s28, 0 }
  0x40   : > { %2763 = vmatprep.mubr.msk.f32.mxu0 %vm296_vm1, %v277_v5  ;;  %v280_v9 = vld [vmem:[%s264_s16 + $0x18] sm:$0xff]  ;;  %v281_v10 = vld [vmem:[%s264_s16 + $0x20] sm:$0xff]  ;;  %v282_v11 = vld [vmem:[%s264_s16 + $0x28] sm:$0xff]  ;;  %s3527_s21 = smov [#allocation6]  }
  0x41   : > { %v283_v12 = vld [vmem:[%s264_s16 + $0x30] sm:$0xff]  ;;  %v284_v13 = vld [vmem:[%s264_s16 + $0x38] sm:$0xff]  ;;  %832 = vmatpush1.bf16.msra.mxu1 %v2873_v20  ;;  %v2888_v28 = vld [vmem:[#allocation3 + $0x1c] ss:$56 sps:$4 sm:$0xff]   ;;  %s253_s16 = sand.u32 1, %s3502_s19   ;;  %s3440_s12 = sshll.u32 %s3527_s21, 4  ;;  %s3441_s12 = int_to_ptr.vmem [resolvable:$false] %s3440_s12 }
  0x42   : > { %2784 = vmatpush3.bf16.msk.msra.mxu0 %vm2780_vm3, %v2779_v6  ;;  %v2882_v23 = vld [vmem:[#allocation3 + $0xec] ss:$56 sps:$4 sm:$0xff]   ;;  %v2879_v24 = vld [vmem:[#allocation3 + $0xe0] ss:$56 sps:$4 sm:$0xff]   ;;  %833 = vmatprep.subr.bf16.mxu1 %v2877_v22  ;;  %v2539_v29 = vld [vmem:[%s4927_s2] ss:$0 sm:$0xff] }
  0x43   : > { %902 = vmatprep.subr.bf16.mxu0 %v2869_v15  ;;  %v2885_v27 = vld [vmem:[#allocation3 + $0x14] ss:$56 sps:$4 sm:$0xff]   ;;  %v2892_v20 = vld [vmem:[#allocation3 + $0x88] ss:$56 sps:$4 sm:$0xff]   ;;  %s4712_s10 = smul.u32 14, %s253_s16  ;;  %s2431_s29 = scalar_lea.sflag [#allocation5], %s253_s16 }
  0x44   : > { %v2894_v17 = vld [vmem:[#allocation3 + $0x8c] ss:$56 sps:$4 sm:$0xff]   ;;  %s3442_s13 = scalar_lea.vmem %s3441_s12, 448 }
  0x45   : > { %2764 = vmatmul.mubr.msk.f32.vlgmr.msra.gmra.mrb[0].mxu0 %vm296_vm1, %v278_v7  ;;  %834 = vmatpush1.bf16.msra.mxu1 %v2879_v24  ;;  %v2900_v24 = vld [vmem:[#allocation3 + $0xfc] ss:$56 sps:$4 sm:$0xff]   ;;  %s4746_s7 = scalar_lea.vmem [#allocation6], %s4712_s10 }
  0x46   : > { %2766 = vmatprep.mubr.msk.f32.mxu0 %vm296_vm1, %v279_v8  ;;  %903 = vmatpush1.bf16.msra.mxu0 %v2867_v16  ;;  %v2891_v16 = vld [vmem:[#allocation3 + $0x84] ss:$56 sps:$4 sm:$0xff]   ;;  %s2445_s24 = sshll.u32 %s4746_s7, 4  ;;  %s4875_s24 = int_to_ptr.vmem [resolvable:$true] %s2445_s24 }
  0x47   : > { %904 = vmatprep.subr.bf16.mxu0 %v2876_v19  ;;  %975 = vmatprep.subr.bf16.mxu1 %v2885_v27  ;;  %v2889_v19 = vld [vmem:[#allocation3 + $0x80] ss:$56 sps:$4 sm:$0xff]   ;;  %s3436_s9 = scalar_lea.vmem %s4875_s24, 224  ;;  %p3443_p1 = scmp.lt.s32.totalorder %s4875_s24, %s3441_s12 }
  0x48   : > { %p3437_p8 = scmp.ne.s32.totalorder %s4875_s24, %s3436_s9  ;;  %p3444_p3 = scmp.lt.s32.totalorder %s3442_s13, %s3436_s9 }
  0x49   : > { %2767 = vmatmul.mubr.msk.f32.gmra.mrb[2].mxu0 %vm296_vm1, %v280_v9 }
  0x4a   : > { %2769 = vmatprep.mubr.msk.f32.mxu0 %vm296_vm1, %v281_v10  ;;  %905 = vmatpush1.bf16.msra.mxu0 %v2874_v21  ;;  %v2883_v10 = vld [vmem:[#allocation3 + $0x10] ss:$56 sps:$4 sm:$0xff]   ;;  %p3438_p11 = pnand %p3437_p8, %p5086_p10  ;;  %p3445_p5 = por %p3444_p3, %p3443_p1 }
  0x4b   : > { %906 = vmatprep.subr.bf16.mxu0 %v2882_v23  ;;  %v2897_v23 = vld [vmem:[#allocation3 + $0xf4] ss:$56 sps:$4 sm:$0xff]  }
  0x4c   : > { %p3439_p13 = pneg %p3438_p11 }
  0x4d   : > { %2770 = vmatmul.mubr.msk.f32.gmra.mrb[4].mxu0 %vm296_vm1, %v282_v11  ;;  %v2886_v11 = vld [vmem:[#allocation3 + $0x18] ss:$56 sps:$4 sm:$0xff]  }
  0x4e   : > { %2772 = vmatprep.mubr.msk.f32.mxu0 %vm296_vm1, %v283_v12  ;;  %907 = vmatpush1.bf16.msra.mxu0 %v2880_v25  ;;  %p3446_p6 = pnand %p3445_p5, %p3439_p13 }
  0x4f   : > { %1048 = vmatprep.subr.bf16.mxu0 %v2888_v28 }
  0x51   : > { %2773 = vmatmul.mubr.msk.f32.gmra.mrb[6].mxu0 %vm296_vm1, %v284_v13 }
  0x52   : > { %934 = vmatprep.mubr.bf16.mxu0 %v3524_v26 }
 0x118   : > { %v2765_v30 = vpop.f32.mrb[0].mxu0 }
 0x119   : > { %v397_v31 = vadd.f32 %v2765_v30, %v2539_v29  ;;  %v391_v32 = vpop.f32.mrb[1].mxu0 }
 0x11a   : > { %v392_v33 = vadd.f32 %v2539_v29, %v391_v32  ;;  %v2898_v32 = vld [vmem:[#allocation3 + $0xf8] ss:$56 sps:$4 sm:$0xff]  }
 0x11b   : > { %v2550_v34 = vmul.f32 -1.442695, %v397_v31 }
 0x11c   : > { %v2549_v35 = vmul.f32 -1.442695, %v392_v33  ;;  %v2768_v36 = vpop.f32.mrb[2].mxu0 }
 0x11d   : > { %2928 = vpow2.f32 %v2550_v34  ;;  %v407_v37 = vadd.f32 %v2768_v36, %v2539_v29  ;;  %v401_v38 = vpop.f32.mrb[3].mxu0  ;;  %v2906_v34 = vld [vmem:[#allocation3 + $0x2c] ss:$56 sps:$4 sm:$0xff]  }
 0x11e   : > { %2930 = vpow2.f32 %v2549_v35  ;;  %v402_v39 = vadd.f32 %v2539_v29, %v401_v38 }
 0x11f   : > { %v2552_v40 = vmul.f32 -1.442695, %v407_v37 }
 0x120   : > { %v2551_v41 = vmul.f32 -1.442695, %v402_v39  ;;  %v2771_v42 = vpop.f32.mrb[4].mxu0 }
 0x121   : > { %2932 = vpow2.f32 %v2552_v40  ;;  %v3681_v43 = vadd.f32 %v2771_v42, %v2539_v29  ;;  %v411_v44 = vpop.f32.mrb[5].mxu0  ;;  %v2904_v40 = vld [vmem:[#allocation3 + $0x28] ss:$56 sps:$4 sm:$0xff]   ;;  %v2912_v42 = vld [vmem:[#allocation3 + $0x9c] ss:$56 sps:$4 sm:$0xff]  }
 0x122   : > { %2934 = vpow2.f32 %v2551_v41  ;;  %v3683_v45 = vadd.f32 %v2539_v29, %v411_v44  ;;  %v2909_v41 = vld [vmem:[#allocation3 + $0x94] ss:$56 sps:$4 sm:$0xff]   ;;  %v2910_v44 = vld [vmem:[#allocation3 + $0x98] ss:$56 sps:$4 sm:$0xff]  }
 0x123   : > { %v2554_v46 = vmul.f32 -1.442695, %v3681_v43 }
 0x124   : > { %v2553_v47 = vmul.f32 -1.442695, %v3683_v45  ;;  %v2774_v48 = vpop.f32.mrb[6].mxu0 }
 0x125   : > { %2936 = vpow2.f32 %v2554_v46  ;;  %v3687_v49 = vadd.f32 %v2774_v48, %v2539_v29  ;;  %v421_v50 = vpop.f32.mrb[7].mxu0  ;;  %v2918_v46 = vld [vmem:[#allocation3 + $0x10c] ss:$56 sps:$4 sm:$0xff]   ;;  %v2916_v48 = vld [vmem:[#allocation3 + $0x108] ss:$56 sps:$4 sm:$0xff]  }
 0x126   : > { %2938 = vpow2.f32 %v2553_v47  ;;  %v3689_v51 = vadd.f32 %v2539_v29, %v421_v50  ;;  %v2913_v47 = vld [vmem:[#allocation3 + $0x100] ss:$56 sps:$4 sm:$0xff]   ;;  %v2919_v50 = vld [vmem:[#allocation3 + $0x30] ss:$56 sps:$4 sm:$0xff]  }
 0x127   : > { %v2929_v52 = vpop.eup %2928  ;;  %v2556_v53 = vmul.f32 -1.442695, %v3687_v49 }
 0x128   : > { %v2931_v54 = vpop.eup %2930  ;;  %v455_v55 = vadd.f32 1.0, %v2929_v52  ;;  %v2555_v56 = vmul.f32 -1.442695, %v3689_v51  ;;  %v2922_v52 = vld [vmem:[#allocation3 + $0xa0] ss:$56 sps:$4 sm:$0xff]  }
 0x129   : > { %v454_v57 = vadd.f32 1.0, %v2931_v54  ;;  %2940 = vpow2.f32 %v2556_v53  ;;  %v2927_v53 = vld [vmem:[#allocation3 + $0x114] ss:$56 sps:$4 sm:$0xff]   ;;  %v2925_v54 = vld [vmem:[#allocation3 + $0x110] ss:$56 sps:$4 sm:$0xff]  }
 0x12a   : > { %2942 = vrcp.f32 %v455_v55  ;;  %v4935_v55 = vlaneseq }
 0x12b   : > { %v2933_v58 = vpop.eup %2932  ;;  %2944 = vrcp.f32 %v454_v57 }
 0x12c   : > { %v2935_v59 = vpop.eup %2934  ;;  %v457_v60 = vadd.f32 1.0, %v2933_v58  ;;  %2946 = vpow2.f32 %v2555_v56  ;;  %v3788_v56 = vshrl.u32 %v4935_v55, 7 }
 0x12d   : > { %v456_v61 = vadd.f32 1.0, %v2935_v59  ;;  %v3795_v59 = vld [vmem:[%s4929_s4] sm:$0xff] }
 0x12e   : > { %2948 = vrcp.f32 %v457_v60  ;;  %v4939_v57 = vsub.s32 0, %v3788_v56  ;;  %v4938_v58 = vsub.s32 2, %v3788_v56  ;;  %v4937_v60 = vsub.s32 1, %v3788_v56 }
 0x12f   : > { %v2937_v62 = vpop.eup %2936  ;;  %2950 = vrcp.f32 %v456_v61 }
 0x130   : > { %v2939_v63 = vpop.eup %2938  ;;  %v459_v0 = vadd.f32 1.0, %v2937_v62  ;;  %v3802_v61 = vrot.slane %v3795_v59, %v4939_v57  ;;  %v3807_v62 = vrot.slane %v3795_v59, %v4938_v58 }
 0x131   : > { %v458_v1 = vadd.f32 1.0, %v2939_v63  ;;  %v3812_v63 = vrot.slane %v3795_v59, %v4937_v60 }
 0x132   : > { %2952 = vrcp.f32 %v459_v0 }
 0x133   : > { %v2941_v2 = vpop.eup %2940  ;;  %2954 = vrcp.f32 %v458_v1 }
 0x134   : > { %v2943_v3 = vpop.eup %2942  ;;  %v461_v4 = vadd.f32 1.0, %v2941_v2 }
 0x135   : > { %v2945_v5 = vpop.eup %2944  ;;  %v479_v6 = vmul.f32 %v2943_v3, %v397_v31  ;;  %v2895_v31 = vld [vmem:[#allocation3 + $0xf0] ss:$56 sps:$4 sm:$0xff]  }
 0x136   : > { %v2947_v7 = vpop.eup %2946  ;;  %v478_v8 = vmul.f32 %v2945_v5, %v392_v33  ;;  %2956 = vrcp.f32 %v461_v4  ;;  %v2903_v33 = vld [vmem:[#allocation3 + $0x24] ss:$56 sps:$4 sm:$0xff]  }
 0x137   : > { %v460_v9 = vadd.f32 1.0, %v2947_v7 }
 0x138   : > { %v2949_v12 = vpop.eup %2948  ;;  %v3693_v13 = vpack.c.bf16 %v479_v6, %v478_v8 }
 0x139   : > { %v2951_v14 = vpop.eup %2950  ;;  %v481_v15 = vmul.f32 %v2949_v12, %v407_v37  ;;  %2958 = vrcp.f32 %v460_v9 }
 0x13a   : > { %v480_v18 = vmul.f32 %v2951_v14, %v402_v39  ;;  %2599 = vmatmul.mubr.msk.bf16.vlgmr.msra.gmra.mrb[0].mxu1 %vm816_vm4, %v3693_v13  ;;  %2603 = vmatmul.mubr.msk.bf16.vlgmr.msra.gmra.mrb[8].mxu0 %vm816_vm4, %v3693_v13  ;;  %v2901_v39 = vld [vmem:[#allocation3 + $0x20] ss:$56 sps:$4 sm:$0xff]  }
 0x13b   : > { %976 = vmatpush1.bf16.msra.mxu1 %v2883_v10  ;;  %1049 = vmatpush1.bf16.msra.mxu0 %v2886_v11 }
 0x13c   : > { %v2953_v21 = vpop.eup %2952  ;;  %v3699_v22 = vpack.c.bf16 %v481_v15, %v480_v18  ;;  %871 = vmatprep.mubr.bf16.mxu1 %v3524_v26  ;;  %944 = vmatprep.mubr.bf16.mxu0 %v3524_v26 }
 0x13d   : > { %v2955_v25 = vpop.eup %2954  ;;  %v483_v27 = vmul.f32 %v2953_v21, %v3681_v43  ;;  %977 = vmatprep.subr.bf16.mxu1 %v2891_v16  ;;  %1050 = vmatprep.subr.bf16.mxu0 %v2894_v17  ;;  %v2907_v43 = vld [vmem:[#allocation3 + $0x90] ss:$56 sps:$4 sm:$0xff]  }
 0x13e   : > { %v482_v28 = vmul.f32 %v2955_v25, %v3683_v45  ;;  %v2915_v45 = vld [vmem:[#allocation3 + $0x104] ss:$56 sps:$4 sm:$0xff]  }
 0x13f   : > { %978 = vmatpush1.bf16.msra.mxu1 %v2889_v19  ;;  %1051 = vmatpush1.bf16.msra.mxu0 %v2892_v20 }
 0x140   : > { %v2957_v29 = vpop.eup %2956  ;;  %v3705_v30 = vpack.c.bf16 %v483_v27, %v482_v28  ;;  %979 = vmatprep.subr.bf16.mxu1 %v2897_v23  ;;  %1052 = vmatprep.subr.bf16.mxu0 %v2900_v24 }
 0x141   : > { %v485_v35 = vmul.f32 %v2957_v29, %v3687_v49  ;;  %v2921_v49 = vld [vmem:[#allocation3 + $0x34] ss:$56 sps:$4 sm:$0xff]  }
 0x142   : > { %2600 = vmatmul.mubr.msk.bf16.gmra.mrb[4].mxu1 %vm816_vm4, %v3699_v22  ;;  %2604 = vmatmul.mubr.msk.bf16.gmra.mrb[12].mxu0 %vm816_vm4, %v3699_v22 }
 0x143   : > { %v2959_v36 = vpop.eup %2958  ;;  %881 = vmatprep.mubr.bf16.mxu1 %v3524_v26  ;;  %954 = vmatprep.mubr.bf16.mxu0 %v3524_v26 }
 0x144   : > { %v484_v37 = vmul.f32 %v2959_v36, %v3689_v51  ;;  %980 = vmatpush1.bf16.msra.mxu1 %v2895_v31  ;;  %1053 = vmatpush1.bf16.msra.mxu0 %v2898_v32  ;;  %v2924_v51 = vld [vmem:[#allocation3 + $0xa4] ss:$56 sps:$4 sm:$0xff]  }
 0x145   : > { %1121 = vmatprep.subr.bf16.mxu1 %v2903_v33  ;;  %1194 = vmatprep.subr.bf16.mxu0 %v2906_v34 }
 0x146   : > { %v3715_v38 = vpack.c.bf16 %v485_v35, %v484_v37 }
 0x14a   : > { %2601 = vmatmul.mubr.msk.bf16.gmra.mrb[8].mxu1 %vm816_vm4, %v3705_v30  ;;  %2605 = vmatmul.mubr.msk.bf16.gmra.mrb[16].mxu0 %vm816_vm4, %v3705_v30 }
 0x14b   : > { %891 = vmatprep.mubr.bf16.mxu1 %v3524_v26  ;;  %964 = vmatprep.mubr.bf16.mxu0 %v3524_v26 }
 0x152   : > { %2602 = vmatmul.mubr.msk.bf16.gmra.mrb[12].mxu1 %vm816_vm4, %v3715_v38  ;;  %2606 = vmatmul.mubr.msk.bf16.gmra.mrb[20].mxu0 %vm816_vm4, %v3715_v38 }
 0x153   : > { %1007 = vmatprep.mubr.bf16.mxu1 %v3524_v26  ;;  %1080 = vmatprep.mubr.bf16.mxu0 %v3524_v26 }
 0x15a   : > { %2607 = vmatmul.mubr.msk.bf16.vlgmr.msra.gmra.mrb[16].mxu1 %vm816_vm4, %v3693_v13  ;;  %2611 = vmatmul.mubr.msk.bf16.vlgmr.msra.gmra.mrb[24].mxu0 %vm816_vm4, %v3693_v13 }
 0x15b   : > { %1122 = vmatpush1.bf16.msra.mxu1 %v2901_v39  ;;  %1195 = vmatpush1.bf16.msra.mxu0 %v2904_v40 }
 0x15c   : > { %1017 = vmatprep.mubr.bf16.mxu1 %v3524_v26  ;;  %1090 = vmatprep.mubr.bf16.mxu0 %v3524_v26 }
 0x15d   : > { %1123 = vmatprep.subr.bf16.mxu1 %v2909_v41  ;;  %1196 = vmatprep.subr.bf16.mxu0 %v2912_v42 }
 0x15f   : > { %1124 = vmatpush1.bf16.msra.mxu1 %v2907_v43  ;;  %1197 = vmatpush1.bf16.msra.mxu0 %v2910_v44 }
 0x160   : > { %1125 = vmatprep.subr.bf16.mxu1 %v2915_v45  ;;  %1198 = vmatprep.subr.bf16.mxu0 %v2918_v46 }
 0x162   : > { %2608 = vmatmul.mubr.msk.bf16.gmra.mrb[20].mxu1 %vm816_vm4, %v3699_v22  ;;  %2612 = vmatmul.mubr.msk.bf16.gmra.mrb[28].mxu0 %vm816_vm4, %v3699_v22 }
 0x163   : > { %1027 = vmatprep.mubr.bf16.mxu1 %v3524_v26  ;;  %1100 = vmatprep.mubr.bf16.mxu0 %v3524_v26 }
 0x164   : > { %1126 = vmatpush1.bf16.msra.mxu1 %v2913_v47  ;;  %1199 = vmatpush1.bf16.msra.mxu0 %v2916_v48 }
 0x165   : > { %2785 = vmatprep.subr.bf16.mxu1 %v2921_v49  ;;  %1267 = vmatprep.subr.bf16.mxu0 %v2921_v49 }
 0x16a   : > { %2609 = vmatmul.mubr.msk.bf16.gmra.mrb[24].mxu1 %vm816_vm4, %v3705_v30  ;;  %2613 = vmatmul.mubr.msk.bf16.gmra.mrb[32].mxu0 %vm816_vm4, %v3705_v30 }
 0x16b   : > { %1037 = vmatprep.mubr.bf16.mxu1 %v3524_v26  ;;  %1110 = vmatprep.mubr.bf16.mxu0 %v3524_v26 }
 0x172   : > { %2610 = vmatmul.mubr.msk.bf16.gmra.mrb[28].mxu1 %vm816_vm4, %v3715_v38  ;;  %2614 = vmatmul.mubr.msk.bf16.gmra.mrb[36].mxu0 %vm816_vm4, %v3715_v38 }
 0x173   : > { %1153 = vmatprep.mubr.bf16.mxu1 %v3524_v26  ;;  %1226 = vmatprep.mubr.bf16.mxu0 %v3524_v26 }
 0x17a   : > { %2615 = vmatmul.mubr.msk.bf16.vlgmr.msra.gmra.mrb[32].mxu1 %vm816_vm4, %v3693_v13  ;;  %2619 = vmatmul.mubr.msk.bf16.vlgmr.msra.gmra.mrb[40].mxu0 %vm816_vm4, %v3693_v13 }
 0x17b   : > { %2788 = vmatpush1.bf16.msra.mxu1 %v2919_v50  ;;  %1268 = vmatpush1.bf16.msra.mxu0 %v2919_v50 }
 0x17c   : > { %1163 = vmatprep.mubr.bf16.mxu1 %v3524_v26  ;;  %1236 = vmatprep.mubr.bf16.mxu0 %v3524_v26 }
 0x17d   : > { %2786 = vmatprep.subr.bf16.mxu1 %v2924_v51  ;;  %1269 = vmatprep.subr.bf16.mxu0 %v2924_v51 }
 0x17f   : > { %2789 = vmatpush1.bf16.msra.mxu1 %v2922_v52  ;;  %1270 = vmatpush1.bf16.msra.mxu0 %v2922_v52 }
 0x180   : > { %2787 = vmatprep.subr.bf16.mxu1 %v2927_v53  ;;  %1271 = vmatprep.subr.bf16.mxu0 %v2927_v53 }
 0x182   : > { %2616 = vmatmul.mubr.msk.bf16.gmra.mrb[36].mxu1 %vm816_vm4, %v3699_v22  ;;  %2620 = vmatmul.mubr.msk.bf16.gmra.mrb[44].mxu0 %vm816_vm4, %v3699_v22 }
 0x183   : > { %1173 = vmatprep.mubr.bf16.mxu1 %v3524_v26  ;;  %1246 = vmatprep.mubr.bf16.mxu0 %v3524_v26 }
 0x184   : > { %2790 = vmatpush1.bf16.msra.mxu1 %v2925_v54  ;;  %1272 = vmatpush1.bf16.msra.mxu0 %v2925_v54 }
 0x18a   : > { %2617 = vmatmul.mubr.msk.bf16.gmra.mrb[40].mxu1 %vm816_vm4, %v3705_v30  ;;  %2621 = vmatmul.mubr.msk.bf16.gmra.mrb[48].mxu0 %vm816_vm4, %v3705_v30 }
 0x18b   : > { %1183 = vmatprep.mubr.bf16.mxu1 %v3524_v26  ;;  %1256 = vmatprep.mubr.bf16.mxu0 %v3524_v26 }
 0x192   : > { %2618 = vmatmul.mubr.msk.bf16.gmra.mrb[44].mxu1 %vm816_vm4, %v3715_v38  ;;  %2622 = vmatmul.mubr.msk.bf16.gmra.mrb[52].mxu0 %vm816_vm4, %v3715_v38 }
 0x193   : > { %1299 = vmatprep.mubr.bf16.mxu0 %v3524_v26  ;;  %1309 = vmatprep.mubr.bf16.mxu1 %v3524_v26 }
 0x19a   : > { %2623 = vmatmul.mubr.msk.bf16.vlgmr.msra.gmra.mrb[56].mxu0 %vm816_vm4, %v3693_v13  ;;  %2624 = vmatmul.mubr.msk.bf16.vlgmr.msra.gmra.mrb[48].mxu1 %vm816_vm4, %v3699_v22 }
 0x19b   : > { %1319 = vmatprep.mubr.bf16.mxu1 %v3524_v26 }
 0x1a2   : > { %2625 = vmatmul.mubr.msk.bf16.gmra.mrb[52].mxu1 %vm816_vm4, %v3705_v30 }
 0x1a3   : > { %1329 = vmatprep.mubr.bf16.mxu1 %v3524_v26  ;;  %v4936_v26 = vsub.s32 3, %v3788_v56 }
 0x1a5   : > { %v3817_v0 = vrot.slane %v3795_v59, %v4936_v26 }
 0x1aa   : > { %2626 = vmatmul.mubr.msk.bf16.gmra.mrb[56].mxu1 %vm816_vm4, %v3715_v38 }
 0x20d   : > { %v863_v1 = vpop.f32.mrb[0].mxu1  ;;  %v936_v2 = vpop.f32.mrb[8].mxu0 }
 0x20e   : > { %v3820_v3 = vadd.f32 %v863_v1, %v3802_v61  ;;  %v3823_v4 = vadd.f32 %v936_v2, %v3807_v62  ;;  %v865_v5 = vpop.f32.mrb[1].mxu1  ;;  %v938_v6 = vpop.f32.mrb[9].mxu0 }
 0x20f   : > { %v3826_v7 = vadd.f32 %v865_v5, %v3812_v63  ;;  %v3829_v8 = vadd.f32 %v938_v6, %v3817_v0  ;;  %v867_v9 = vpop.f32.mrb[2].mxu1  ;;  %v940_v10 = vpop.f32.mrb[10].mxu0 }
 0x210   : > { %v2627_v11 = vmul.f32 -1.442695, %v3820_v3  ;;  %v2629_v12 = vmul.f32 -1.442695, %v3823_v4  ;;  %v3834_v13 = vadd.f32 %v867_v9, %v3802_v61  ;;  %v3837_v14 = vadd.f32 %v940_v10, %v3807_v62  ;;  %v869_v15 = vpop.f32.mrb[3].mxu1  ;;  %v942_v16 = vpop.f32.mrb[11].mxu0 }
 0x211   : > { %v2628_v17 = vmul.f32 -1.442695, %v3826_v7  ;;  %v2630_v18 = vmul.f32 -1.442695, %v3829_v8  ;;  %v3842_v19 = vadd.f32 %v869_v15, %v3812_v63  ;;  %v3845_v20 = vadd.f32 %v942_v16, %v3817_v0 }
 0x212   : > { %2960 = vpow2.f32 %v2627_v11  ;;  %v2641_v21 = vmul.f32 -1.442695, %v3834_v13  ;;  %v2643_v22 = vmul.f32 -1.442695, %v3837_v14 }
 0x213   : > { %2962 = vpow2.f32 %v2629_v12  ;;  %v2642_v23 = vmul.f32 -1.442695, %v3842_v19  ;;  %v2644_v24 = vmul.f32 -1.442695, %v3845_v20 }
 0x214   : > { %2964 = vpow2.f32 %v2628_v17 }
 0x215   : > { %2966 = vpow2.f32 %v2630_v18  ;;  %v873_v25 = vpop.f32.mrb[4].mxu1  ;;  %v946_v27 = vpop.f32.mrb[12].mxu0 }
 0x216   : > { %2968 = vpow2.f32 %v2641_v21  ;;  %v3852_v28 = vadd.f32 %v873_v25, %v3802_v61  ;;  %v3855_v29 = vadd.f32 %v946_v27, %v3807_v62  ;;  %v875_v30 = vpop.f32.mrb[5].mxu1  ;;  %v948_v31 = vpop.f32.mrb[13].mxu0 }
 0x217   : > { %2970 = vpow2.f32 %v2643_v22  ;;  %v3858_v32 = vadd.f32 %v875_v30, %v3812_v63  ;;  %v3861_v33 = vadd.f32 %v948_v31, %v3817_v0  ;;  %v877_v34 = vpop.f32.mrb[6].mxu1  ;;  %v950_v35 = vpop.f32.mrb[14].mxu0 }
 0x218   : > { %2972 = vpow2.f32 %v2642_v23  ;;  %v2655_v36 = vmul.f32 -1.442695, %v3852_v28  ;;  %v2657_v37 = vmul.f32 -1.442695, %v3855_v29  ;;  %v3866_v38 = vadd.f32 %v877_v34, %v3802_v61  ;;  %v879_v39 = vpop.f32.mrb[7].mxu1  ;;  %v952_v40 = vpop.f32.mrb[15].mxu0 }
 0x219   : > { %2974 = vpow2.f32 %v2644_v24  ;;  %v2656_v41 = vmul.f32 -1.442695, %v3858_v32  ;;  %v2658_v42 = vmul.f32 -1.442695, %v3861_v33  ;;  %v3872_v12 = vadd.f32 %v950_v35, %v3807_v62 }
 0x21a   : > { %2976 = vpow2.f32 %v2655_v36  ;;  %v2669_v43 = vmul.f32 -1.442695, %v3866_v38  ;;  %v3875_v18 = vadd.f32 %v879_v39, %v3812_v63  ;;  %v3879_v31 = vadd.f32 %v952_v40, %v3817_v0 }
 0x21b   : > { %2978 = vpow2.f32 %v2657_v37  ;;  %v2671_v30 = vmul.f32 -1.442695, %v3872_v12 }
 0x21c   : > { %v2961_v44 = vpop.eup %2960  ;;  %2980 = vpow2.f32 %v2656_v41  ;;  %v2670_v37 = vmul.f32 -1.442695, %v3875_v18 }
 0x21d   : > { %v2963_v45 = vpop.eup %2962  ;;  %v1676_v46 = vadd.f32 1.0, %v2961_v44  ;;  %2982 = vpow2.f32 %v2658_v42  ;;  %v883_v47 = vpop.f32.mrb[8].mxu1 }
 0x21e   : > { %v956_v48 = vpop.f32.mrb[16].mxu0  ;;  %v2965_v49 = vpop.eup %2964  ;;  %v1678_v50 = vadd.f32 1.0, %v2963_v45  ;;  %2984 = vpow2.f32 %v2669_v43  ;;  %v3883_v39 = vadd.f32 %v883_v47, %v3802_v61 }
 0x21f   : > { %v885_v51 = vpop.f32.mrb[9].mxu1  ;;  %v958_v52 = vpop.f32.mrb[17].mxu0  ;;  %2986 = vrcp.f32 %v1676_v46  ;;  %v1677_v54 = vadd.f32 1.0, %v2965_v49  ;;  %v3888_v45 = vadd.f32 %v956_v48, %v3807_v62 }
 0x220   : > { %v2967_v53 = vpop.eup %2966  ;;  %v887_v1 = vpop.f32.mrb[10].mxu1  ;;  %2988 = vrcp.f32 %v1678_v50  ;;  %v3891_v40 = vadd.f32 %v885_v51, %v3812_v63 }
 0x221   : > { %v960_v2 = vpop.f32.mrb[18].mxu0  ;;  %v2969_v5 = vpop.eup %2968  ;;  %v1679_v6 = vadd.f32 1.0, %v2967_v53  ;;  %2990 = vrcp.f32 %v1677_v54  ;;  %v3898_v53 = vadd.f32 %v958_v52, %v3817_v0  ;;  %v3901_v54 = vadd.f32 %v887_v1, %v3802_v61 }
 0x222   : > { %v889_v9 = vpop.f32.mrb[11].mxu1  ;;  %v2971_v10 = vpop.eup %2970  ;;  %v1690_v11 = vadd.f32 1.0, %v2969_v5  ;;  %v2672_v1 = vmul.f32 -1.442695, %v3879_v31 }
 0x223   : > { %v962_v15 = vpop.f32.mrb[19].mxu0  ;;  %v2973_v16 = vpop.eup %2972  ;;  %2992 = vrcp.f32 %v1679_v6  ;;  %v1692_v17 = vadd.f32 1.0, %v2971_v10  ;;  %v3908_v10 = vadd.f32 %v960_v2, %v3807_v62  ;;  %v2684_v2 = vmul.f32 -1.442695, %v3891_v40 }
 0x224   : > { %v2975_v21 = vpop.eup %2974  ;;  %2994 = vrcp.f32 %v1690_v11  ;;  %v1691_v22 = vadd.f32 1.0, %v2973_v16  ;;  %v3911_v11 = vadd.f32 %v889_v9, %v3812_v63  ;;  %v2697_v9 = vmul.f32 -1.442695, %v3901_v54 }
 0x225   : > { %v2977_v23 = vpop.eup %2976  ;;  %2996 = vrcp.f32 %v1692_v17  ;;  %v1693_v24 = vadd.f32 1.0, %v2975_v21  ;;  %v893_v34 = vpop.f32.mrb[12].mxu1  ;;  %4958 = vst [vmem:[#allocation9_spill] sm:$0xff] %v3908_v10  ;;  %v2683_v21 = vmul.f32 -1.442695, %v3883_v39 }
 0x226   : > { %v2979_v25 = vpop.eup %2978  ;;  %2998 = vrcp.f32 %v1691_v22  ;;  %v1704_v27 = vadd.f32 1.0, %v2977_v23  ;;  %v966_v41 = vpop.f32.mrb[20].mxu0  ;;  %4959 = vst [vmem:[#allocation10_spill] sm:$0xff] %v3911_v11  ;;  %v2685_v22 = vmul.f32 -1.442695, %v3888_v45 }
 0x227   : > { %v2981_v35 = vpop.eup %2980  ;;  %3000 = vrcp.f32 %v1693_v24  ;;  %v1706_v36 = vadd.f32 1.0, %v2979_v25  ;;  %v3885_v42 = vpop.f32.mrb[13].mxu1  ;;  %v2686_v24 = vmul.f32 -1.442695, %v3898_v53  ;;  %v3942_v58 = vadd.f32 %v966_v41, %v3807_v62 }
 0x228   : > { %v2983_v43 = vpop.eup %2982  ;;  %3002 = vrcp.f32 %v1704_v27  ;;  %v1705_v44 = vadd.f32 1.0, %v2981_v35  ;;  %v3893_v46 = vpop.f32.mrb[21].mxu0  ;;  %v2699_v27 = vmul.f32 -1.442695, %v3908_v10  ;;  %v2698_v35 = vmul.f32 -1.442695, %v3911_v11 }
 0x229   : > { %v3895_v49 = vpop.f32.mrb[14].mxu1  ;;  %v2985_v50 = vpop.eup %2984  ;;  %3004 = vrcp.f32 %v1706_v36  ;;  %v1707_v47 = vadd.f32 1.0, %v2983_v43  ;;  %v3924_v36 = vadd.f32 %v962_v15, %v3817_v0 }
 0x22a   : > { %v3903_v5 = vpop.f32.mrb[22].mxu0  ;;  %v3905_v48 = vpop.f32.mrb[15].mxu1  ;;  %3006 = vrcp.f32 %v1705_v44  ;;  %v1718_v51 = vadd.f32 1.0, %v2985_v50 }
 0x22b   : > { %v2987_v6 = vpop.eup %2986  ;;  %v3913_v16 = vpop.f32.mrb[23].mxu0  ;;  %3008 = vrcp.f32 %v1707_v47 }
 0x22c   : > { %v2989_v52 = vpop.eup %2988  ;;  %3010 = vrcp.f32 %v1718_v51  ;;  %v2012_v50 = vmul.f32 %v2987_v6, %v3820_v3  ;;  %v3933_v51 = vadd.f32 %v893_v34, %v3802_v61 }
 0x22d   : > { %v2991_v17 = vpop.eup %2990  ;;  %3012 = vpow2.f32 %v2671_v30  ;;  %v3926_v43 = vpop.f32.mrb[16].mxu1  ;;  %v2014_v15 = vmul.f32 %v2989_v52, %v3823_v4 }
 0x22e   : > { %v2993_v23 = vpop.eup %2992  ;;  %3014 = vpow2.f32 %v2670_v37  ;;  %v3928_v44 = vpop.f32.mrb[24].mxu0  ;;  %v2013_v34 = vmul.f32 %v2991_v17, %v3826_v7  ;;  %v2700_v7 = vmul.f32 -1.442695, %v3924_v36 }
 0x22f   : > { %v2995_v25 = vpop.eup %2994  ;;  %3016 = vpow2.f32 %v2672_v1  ;;  %v3935_v37 = vpop.f32.mrb[17].mxu1  ;;  %v2015_v52 = vmul.f32 %v2993_v23, %v3829_v8 }
 0x230   : > { %v2997_v30 = vpop.eup %2996  ;;  %v2026_v47 = vmul.f32 %v2995_v25, %v3834_v13  ;;  %v3937_v55 = vpop.f32.mrb[25].mxu0  ;;  %3018 = vpow2.f32 %v2683_v21 }
 0x231   : > { %v2999_v26 = vpop.eup %2998  ;;  %v2028_v60 = vmul.f32 %v2997_v30, %v3837_v14  ;;  %v3944_v3 = vpop.f32.mrb[18].mxu1  ;;  %3020 = vpow2.f32 %v2685_v22  ;;  %v2711_v22 = vmul.f32 -1.442695, %v3933_v51 }
 0x232   : > { %v3946_v13 = vpop.f32.mrb[26].mxu0  ;;  %v3001_v6 = vpop.eup %3000  ;;  %v2126_v1 = vadd.f32 %v2026_v47, %v2012_v50  ;;  %v2027_v25 = vmul.f32 %v2999_v26, %v3842_v19  ;;  %3022 = vpow2.f32 %v2684_v2 }
 0x233   : > { %v3950_v57 = vpop.f32.mrb[19].mxu1  ;;  %v3952_v4 = vpop.f32.mrb[27].mxu0  ;;  %v2152_v41 = vadd.f32 %v2028_v60, %v2014_v15  ;;  %v2029_v21 = vmul.f32 %v3001_v6, %v3845_v20  ;;  %3024 = vpow2.f32 %v2686_v24  ;;  %v2713_v20 = vmul.f32 -1.442695, %v3942_v58 }
 0x234   : > { %v3003_v14 = vpop.eup %3002  ;;  %v2139_v11 = vadd.f32 %v2027_v25, %v2013_v34  ;;  %3026 = vpow2.f32 %v2697_v9 }
 0x235   : > { %v3005_v30 = vpop.eup %3004  ;;  %v2040_v10 = vmul.f32 %v3003_v14, %v3852_v28  ;;  %v2165_v19 = vadd.f32 %v2029_v21, %v2015_v52  ;;  %3028 = vpow2.f32 %v2699_v27  ;;  %v3965_v24 = vpop.f32.mrb[20].mxu1  ;;  %v4942_v52 = vsub.s32 5, %v3788_v56 }
 0x236   : > { %v3007_v26 = vpop.eup %3006  ;;  %v2042_v17 = vmul.f32 %v3005_v30, %v3855_v29  ;;  %3030 = vpow2.f32 %v2698_v35  ;;  %v3967_v47 = vpop.f32.mrb[28].mxu0  ;;  %v562_v35 = vsub.s32 6, %v3788_v56 }
 0x237   : > { %v3009_v50 = vpop.eup %3008  ;;  %v2127_v8 = vadd.f32 %v2126_v1, %v2040_v10  ;;  %v2041_v60 = vmul.f32 %v3007_v26, %v3858_v32  ;;  %3032 = vpow2.f32 %v2700_v7  ;;  %v4943_v32 = vsub.s32 4, %v3788_v56  ;;  %v3973_v27 = vpop.f32.mrb[21].mxu1 }
 0x238   : > { %v3011_v23 = vpop.eup %3010  ;;  %v3962_v2 = vadd.f32 %v2152_v41, %v2042_v17  ;;  %v2043_v28 = vmul.f32 %v3009_v50, %v3861_v33  ;;  %v3975_v15 = vpop.f32.mrb[29].mxu0  ;;  %3034 = vpow2.f32 %v2711_v22  ;;  %v566_v26 = vsub.s32 7, %v3788_v56 }
 0x239   : > { %v3013_v29 = vpop.eup %3012  ;;  %v3969_v9 = vadd.f32 %v2139_v11, %v2041_v60  ;;  %v2054_v10 = vmul.f32 %v3011_v23, %v3866_v38  ;;  %v3980_v1 = vpop.f32.mrb[22].mxu1  ;;  %3036 = vpow2.f32 %v2713_v20  ;;  %v3994_v22 = vadd.f32 %v3885_v42, %v3812_v63 }
 0x23a   : > { %v3015_v6 = vpop.eup %3014  ;;  %v3977_v34 = vadd.f32 %v2165_v19, %v2043_v28  ;;  %v1720_v33 = vadd.f32 1.0, %v3013_v29  ;;  %v3982_v11 = vpop.f32.mrb[30].mxu0  ;;  %v3999_v60 = vrot.slane %v3795_v59, %v4943_v32  ;;  %v4002_v28 = vrot.slane %v3795_v59, %v562_v35 }
 0x23b   : > { %v3017_v25 = vpop.eup %3016  ;;  %v3984_v38 = vadd.f32 %v2127_v8, %v2054_v10  ;;  %v1719_v14 = vadd.f32 1.0, %v3015_v6  ;;  %v3987_v41 = vpop.f32.mrb[23].mxu1  ;;  %v4007_v29 = vrot.slane %v3795_v59, %v4942_v52  ;;  %v3525_v6 = vmov 1966171168  }
 0x23c   : > { %v3989_v21 = vpop.f32.mrb[31].mxu0  ;;  %v3019_v30 = vpop.eup %3018  ;;  %3038 = vrcp.f32 %v1720_v33  ;;  %v1721_v7 = vadd.f32 1.0, %v3017_v25  ;;  %v4009_v33 = vunpack.c.l.s4 %v3525_v6  ;;  %v4012_v25 = vrot.slane %v3795_v59, %v566_v26 }
 0x23d   : > { %v3021_v19 = vpop.eup %3020  ;;  %3040 = vrcp.f32 %v1719_v14  ;;  %v1732_v17 = vadd.f32 1.0, %v3019_v30  ;;  %v4014_v14 = vpop.f32.mrb[24].mxu1  ;;  %v4029_v26 = vadd.f32 %v3895_v49, %v3802_v61  ;;  %v4041_v32 = vadd.f32 %v3905_v48, %v3812_v63 }
 0x23e   : > { %v3023_v50 = vpop.eup %3022  ;;  %3042 = vrcp.f32 %v1721_v7  ;;  %v1734_v8 = vadd.f32 1.0, %v3021_v19  ;;  %v4016_v30 = vpop.f32.mrb[32].mxu0  ;;  %v2712_v19 = vmul.f32 -1.442695, %v3994_v22 }
 0x23f   : > { %v3025_v20 = vpop.eup %3024  ;;  %3044 = vrcp.f32 %v1732_v17  ;;  %v1733_v23 = vadd.f32 1.0, %v3023_v50  ;;  %v4021_v17 = vadd.f32 %v3893_v46, %v3817_v0  ;;  %v4023_v50 = vpop.f32.mrb[25].mxu1 }
 0x240   : > { %v3027_v42 = vpop.eup %3026  ;;  %3046 = vrcp.f32 %v1734_v8  ;;  %v1735_v10 = vadd.f32 1.0, %v3025_v20  ;;  %v4025_v8 = vpop.f32.mrb[33].mxu0 }
 0x241   : > { %v3029_v35 = vpop.eup %3028  ;;  %3048 = vrcp.f32 %v1733_v23  ;;  %v1746_v7 = vadd.f32 1.0, %v3027_v42  ;;  %4960 = vst [vmem:[#allocation11_spill] sm:$0xff] %v4025_v8  ;;  %v4033_v23 = vadd.f32 %v3903_v5, %v3807_v62  ;;  %v4035_v42 = vpop.f32.mrb[26].mxu1 }
 0x242   : > { %v3031_v20 = vpop.eup %3030  ;;  %3050 = vrcp.f32 %v1735_v10  ;;  %v1748_v59 = vadd.f32 1.0, %v3029_v35  ;;  %4961 = vst [vmem:[#allocation12_spill] sm:$0xff] %v4035_v42  ;;  %v4037_v6 = vpop.f32.mrb[34].mxu0  ;;  %v4045_v10 = vadd.f32 %v3913_v16, %v3817_v0  ;;  %v4053_v35 = vadd.f32 %v3926_v43, %v3999_v60 }
 0x243   : > { %4962 = vst [vmem:[#allocation13_spill] sm:$0xff] %v4037_v6  ;;  %v3033_v46 = vpop.eup %3032  ;;  %3052 = vrcp.f32 %v1746_v7  ;;  %v1747_v52 = vadd.f32 1.0, %v3031_v20  ;;  %v4047_v61 = vpop.f32.mrb[27].mxu1  ;;  %v4057_v7 = vadd.f32 %v3928_v44, %v4002_v28  ;;  %v2714_v0 = vmul.f32 -1.442695, %v4021_v17 }
 0x244   : > { %4963 = vst [vmem:[#allocation14_spill] sm:$0xff] %v4045_v10  ;;  %4964 = vst [vmem:[#allocation15_spill] sm:$0xff] %v4047_v61  ;;  %v4049_v49 = vpop.f32.mrb[35].mxu0  ;;  %v3035_v62 = vpop.eup %3034  ;;  %3054 = vrcp.f32 %v1748_v59  ;;  %v1749_v5 = vadd.f32 1.0, %v3033_v46  ;;  %v4062_v16 = vadd.f32 %v3935_v37, %v4007_v29  ;;  %v2725_v46 = vmul.f32 -1.442695, %v4029_v26 }
 0x245   : > { %4965 = vst [vmem:[#allocation16_spill] sm:$0xff] %v4049_v49  ;;  %4966 = vst [vmem:[#allocation17_spill] sm:$0xff] %v4057_v7  ;;  %v3037_v63 = vpop.eup %3036  ;;  %3056 = vrcp.f32 %v1747_v52  ;;  %v1760_v48 = vadd.f32 1.0, %v3035_v62  ;;  %v2727_v43 = vmul.f32 -1.442695, %v4033_v23  ;;  %v4074_v42 = vpop.f32.mrb[36].mxu0 }
 0x246   : > { %v3039_v20 = vpop.eup %3038  ;;  %3058 = vrcp.f32 %v1749_v5  ;;  %v1762_v59 = vadd.f32 1.0, %v3037_v63  ;;  %v2726_v52 = vmul.f32 -1.442695, %v4041_v32  ;;  %v2728_v62 = vmul.f32 -1.442695, %v4045_v10  ;;  %v4072_v63 = vpop.f32.mrb[28].mxu1 }
 0x247   : > { %v3041_v49 = vpop.eup %3040  ;;  %v2056_v44 = vmul.f32 %v3039_v20, %v3872_v12  ;;  %3060 = vrcp.f32 %v1760_v48  ;;  %v2631_v37 = vmul.f32 -1.442695, %v4053_v35  ;;  %v2633_v5 = vmul.f32 -1.442695, %v4057_v7  ;;  %4967 = vst [vmem:[#allocation18_spill] sm:$0xff] %v4074_v42  ;;  %v4079_v10 = vpop.f32.mrb[29].mxu1 }
 0x248   : > { %v3043_v61 = vpop.eup %3042  ;;  %v2055_v6 = vmul.f32 %v3041_v49, %v3875_v18  ;;  %3062 = vrcp.f32 %v1762_v59  ;;  %v2632_v20 = vmul.f32 -1.442695, %v4062_v16  ;;  %v4081_v18 = vpop.f32.mrb[37].mxu0  ;;  %v4087_v42 = vadd.f32 %v3937_v55, %v4012_v25 }
 0x249   : > { %v3045_v8 = vpop.eup %3044  ;;  %v2154_v12 = vadd.f32 %v3962_v2, %v2056_v44  ;;  %v2057_v48 = vmul.f32 %v3043_v61, %v3879_v31  ;;  %3064 = vpow2.f32 %v2712_v19  ;;  %v4089_v2 = vpop.f32.mrb[30].mxu1 }
 0x24a   : > { %v3047_v49 = vpop.eup %3046  ;;  %v2141_v59 = vadd.f32 %v3969_v9, %v2055_v6  ;;  %v2068_v7 = vmul.f32 %v3045_v8, %v3883_v39  ;;  %3066 = vpow2.f32 %v2714_v0  ;;  %v4091_v31 = vpop.f32.mrb[38].mxu0  ;;  %v4097_v9 = vadd.f32 %v3944_v3, %v3999_v60 }
 0x24b   : > { %v3049_v19 = vpop.eup %3048  ;;  %v2167_v61 = vadd.f32 %v3977_v34, %v2057_v48  ;;  %v2070_v44 = vmul.f32 %v3047_v49, %v3888_v45  ;;  %3068 = vpow2.f32 %v2725_v46  ;;  %v4099_v39 = vpop.f32.mrb[31].mxu1  ;;  %v4107_v34 = vadd.f32 %v3946_v13, %v4002_v28  ;;  %v4969_v13 = vld [vmem:[#allocation9_spill] sm:$0xff] }
 0x24c   : > { %v4101_v8 = vpop.f32.mrb[39].mxu0  ;;  %v3051_v55 = vpop.eup %3050  ;;  %v2129_v6 = vadd.f32 %v3984_v38, %v2068_v7  ;;  %v2069_v0 = vmul.f32 %v3049_v19, %v3891_v40  ;;  %3070 = vpow2.f32 %v2727_v43  ;;  %v4112_v3 = vadd.f32 %v3950_v57, %v4007_v29 }
 0x24d   : > { %4968 = vst [vmem:[#allocation19_spill] sm:$0xff] %v4101_v8  ;;  %v3053_v45 = vpop.eup %3052  ;;  %v2155_v46 = vadd.f32 %v2154_v12, %v2070_v44  ;;  %v2071_v48 = vmul.f32 %v3051_v55, %v3898_v53  ;;  %3072 = vpow2.f32 %v2726_v52  ;;  %v2634_v40 = vmul.f32 -1.442695, %v4087_v42  ;;  %v4970_v44 = vld [vmem:[#allocation10_spill] sm:$0xff] }
 0x24e   : > { %v3055_v49 = vpop.eup %3054  ;;  %v2142_v8 = vadd.f32 %v2141_v59, %v2069_v0  ;;  %v2082_v38 = vmul.f32 %v3053_v45, %v3901_v54  ;;  %3074 = vpow2.f32 %v2728_v62  ;;  %v2645_v12 = vmul.f32 -1.442695, %v4097_v9  ;;  %v4120_v59 = vpop.f32.mrb[32].mxu1 }
 0x24f   : > { %v3057_v7 = vpop.eup %3056  ;;  %v2168_v43 = vadd.f32 %v2167_v61, %v2071_v48  ;;  %v2084_v19 = vmul.f32 %v3055_v49, %v4969_v13  ;;  %3076 = vpow2.f32 %v2631_v37  ;;  %v2647_v57 = vmul.f32 -1.442695, %v4107_v34  ;;  %v4122_v54 = vpop.f32.mrb[40].mxu0 }
 0x250   : > { %v3059_v53 = vpop.eup %3058  ;;  %v2130_v52 = vadd.f32 %v2129_v6, %v2082_v38  ;;  %v2083_v55 = vmul.f32 %v3057_v7, %v4970_v44  ;;  %3078 = vpow2.f32 %v2633_v5  ;;  %v2646_v37 = vmul.f32 -1.442695, %v4112_v3  ;;  %v4126_v45 = vpop.f32.mrb[33].mxu1 }
 0x251   : > { %v3061_v62 = vpop.eup %3060  ;;  %v2156_v0 = vadd.f32 %v2155_v46, %v2084_v19  ;;  %v2085_v61 = vmul.f32 %v3059_v53, %v3924_v36  ;;  %3080 = vpow2.f32 %v2632_v20  ;;  %v4128_v48 = vpop.f32.mrb[41].mxu0 }
 0x252   : > { %v3063_v6 = vpop.eup %3062  ;;  %v4130_v49 = vadd.f32 %v2142_v8, %v2083_v55  ;;  %v2096_v5 = vmul.f32 %v3061_v62, %v3933_v51  ;;  %3082 = vpow2.f32 %v2634_v40  ;;  %v4133_v38 = vpop.f32.mrb[34].mxu1  ;;  %v2328_v62 = vunpack.c.0.s8 %v4009_v33 }
 0x253   : > { %4971 = vst [vmem:[#allocation9_spill] sm:$0xff] %v4133_v38  ;;  %v4135_v7 = vpop.f32.mrb[42].mxu0  ;;  %v3065_v46 = vpop.eup %3064  ;;  %v4137_v13 = vadd.f32 %v2168_v43, %v2085_v61  ;;  %v2098_v36 = vmul.f32 %v3063_v6, %v3942_v58  ;;  %3084 = vpow2.f32 %v2645_v12  ;;  %v4151_v12 = vadd.f32 %v3952_v4, %v4012_v25 }
 0x254   : > { %4972 = vst [vmem:[#allocation10_spill] sm:$0xff] %v4135_v7  ;;  %v4140_v20 = vpop.f32.mrb[35].mxu1  ;;  %v4142_v19 = vpop.f32.mrb[43].mxu0  ;;  %v4144_v8 = vadd.f32 %v2130_v52, %v2096_v5  ;;  %v1761_v44 = vadd.f32 1.0, %v3065_v46  ;;  %3086 = vpow2.f32 %v2647_v57  ;;  %v4155_v57 = vadd.f32 %v3965_v24, %v3999_v60 }
 0x255   : > { %4973 = vst [vmem:[#allocation20_spill] sm:$0xff] %v4140_v20  ;;  %4974 = vst [vmem:[#allocation21_spill] sm:$0xff] %v4142_v19  ;;  %v3067_v53 = vpop.eup %3066  ;;  %v4146_v40 = vadd.f32 %v2156_v0, %v2098_v36  ;;  %3088 = vpow2.f32 %v2646_v37  ;;  %v4159_v33 = vadd.f32 %v3967_v47, %v4002_v28  ;;  %v4161_v37 = vpop.f32.mrb[36].mxu1  ;;  %v4166_v46 = vsub.s32 %v2328_v62, %v3788_v56 }
 0x256   : > { %v3069_v51 = vpop.eup %3068  ;;  %v1763_v55 = vadd.f32 1.0, %v3067_v53  ;;  %3090 = vrcp.f32 %v1761_v44  ;;  %4975 = vst [vmem:[#allocation22_spill] sm:$0xff] %v4161_v37  ;;  %v4163_v5 = vpop.f32.mrb[44].mxu0  ;;  %v4173_v47 = vadd.f32 %v3973_v27, %v4007_v29 }
 0x257   : > { %v3071_v43 = vpop.eup %3070  ;;  %v1774_v58 = vadd.f32 1.0, %v3069_v51  ;;  %4976 = vst [vmem:[#allocation23_spill] sm:$0xff] %v4163_v5  ;;  %v4168_v53 = vpop.f32.mrb[37].mxu1  ;;  %v2648_v51 = vmul.f32 -1.442695, %v4151_v12 }
 0x258   : > { %v3073_v61 = vpop.eup %3072  ;;  %3092 = vrcp.f32 %v1763_v55  ;;  %v1776_v52 = vadd.f32 1.0, %v3071_v43  ;;  %4977 = vst [vmem:[#allocation24_spill] sm:$0xff] %v4168_v53  ;;  %v4175_v55 = vpop.f32.mrb[45].mxu0 }
 0x259   : > { %v3075_v0 = vpop.eup %3074  ;;  %3094 = vrcp.f32 %v1774_v58  ;;  %v1775_v6 = vadd.f32 1.0, %v3073_v61  ;;  %4978 = vst [vmem:[#allocation25_spill] sm:$0xff] %v4175_v55  ;;  %v4177_v43 = vpop.f32.mrb[38].mxu1  ;;  %v2659_v61 = vmul.f32 -1.442695, %v4155_v57 }
 0x25a   : > { %v3077_v4 = vpop.eup %3076  ;;  %3096 = vrcp.f32 %v1776_v52  ;;  %v1777_v36 = vadd.f32 1.0, %v3075_v0  ;;  %4979 = vst [vmem:[#allocation26_spill] sm:$0xff] %v4177_v43  ;;  %v4182_v52 = vadd.f32 %v3975_v15, %v4012_v25  ;;  %v4184_v0 = vpop.f32.mrb[46].mxu0  ;;  %v2661_v55 = vmul.f32 -1.442695, %v4159_v33 }
 0x25b   : > { %v3079_v24 = vpop.eup %3078  ;;  %3098 = vrcp.f32 %v1775_v6  ;;  %v1680_v44 = vadd.f32 1.0, %v3077_v4  ;;  %4980 = vst [vmem:[#allocation27_spill] sm:$0xff] %v4184_v0  ;;  %v4186_v6 = vpop.f32.mrb[39].mxu1  ;;  %v4191_v43 = vadd.f32 %v3980_v1, %v3999_v60  ;;  %v4197_v15 = vadd.f32 %v3982_v11, %v4002_v28 }
 0x25c   : > { %v3081_v58 = vpop.eup %3080  ;;  %3100 = vrcp.f32 %v1777_v36  ;;  %v1682_v62 = vadd.f32 1.0, %v3079_v24  ;;  %4981 = vst [vmem:[#allocation28_spill] sm:$0xff] %v4186_v6  ;;  %v4193_v36 = vpop.f32.mrb[47].mxu0  ;;  %v4201_v6 = vadd.f32 %v3987_v41, %v4007_v29  ;;  %v2660_v0 = vmul.f32 -1.442695, %v4173_v47 }
 0x25d   : > { %v3083_v4 = vpop.eup %3082  ;;  %3102 = vrcp.f32 %v1680_v44  ;;  %v1681_v27 = vadd.f32 1.0, %v3081_v58  ;;  %4982 = vst [vmem:[#allocation29_spill] sm:$0xff] %v4193_v36  ;;  %v4206_v1 = vadd.f32 %v3989_v21, %v4012_v25  ;;  %v4211_v11 = vadd.f32 %v4014_v14, %v3999_v60  ;;  %v4218_v21 = vpop.f32.mrb[40].mxu1 }
 0x25e   : > { %v3085_v24 = vpop.eup %3084  ;;  %3104 = vrcp.f32 %v1682_v62  ;;  %v1683_v53 = vadd.f32 1.0, %v3083_v4  ;;  %v2662_v4 = vmul.f32 -1.442695, %v4182_v52  ;;  %4983 = vst [vmem:[#allocation30_spill] sm:$0xff] %v4218_v21  ;;  %v4220_v37 = vpop.f32.mrb[48].mxu0 }
 0x25f   : > { %v3087_v44 = vpop.eup %3086  ;;  %3106 = vrcp.f32 %v1681_v27  ;;  %v1694_v58 = vadd.f32 1.0, %v3085_v24  ;;  %v2673_v27 = vmul.f32 -1.442695, %v4191_v43  ;;  %v4216_v24 = vadd.f32 %v4016_v30, %v4002_v28  ;;  %4984 = vst [vmem:[#allocation31_spill] sm:$0xff] %v4220_v37 }
 0x260   : > { %v3089_v36 = vpop.eup %3088  ;;  %3108 = vrcp.f32 %v1683_v53  ;;  %v1696_v62 = vadd.f32 1.0, %v3087_v44  ;;  %v2675_v14 = vmul.f32 -1.442695, %v4197_v15  ;;  %v2674_v19 = vmul.f32 -1.442695, %v4201_v6 }
 0x261   : > { %v3091_v41 = vpop.eup %3090  ;;  %3110 = vrcp.f32 %v1694_v58  ;;  %v1695_v5 = vadd.f32 1.0, %v3089_v36  ;;  %v4225_v58 = vpop.f32.mrb[41].mxu1  ;;  %v2676_v21 = vmul.f32 -1.442695, %v4206_v1  ;;  %v4233_v37 = vadd.f32 %v4023_v50, %v4007_v29 }
 0x262   : > { %v3093_v53 = vpop.eup %3092  ;;  %v2097_v44 = vmul.f32 %v3091_v41, %v3994_v22  ;;  %3112 = vrcp.f32 %v1696_v62  ;;  %4985 = vst [vmem:[#allocation32_spill] sm:$0xff] %v4225_v58  ;;  %v4227_v36 = vpop.f32.mrb[49].mxu0 }
 0x263   : > { %4986 = vst [vmem:[#allocation33_spill] sm:$0xff] %v4227_v36  ;;  %v3095_v20 = vpop.eup %3094  ;;  %v2099_v30 = vmul.f32 %v3093_v53, %v4021_v17  ;;  %3114 = vrcp.f32 %v1695_v5  ;;  %4987 = vst [vmem:[#allocation34_spill] sm:$0xff] %v4233_v37  ;;  %v4235_v22 = vpop.f32.mrb[42].mxu1  ;;  %v2687_v36 = vmul.f32 -1.442695, %v4211_v11 }
 0x264   : > { %4988 = vst [vmem:[#allocation35_spill] sm:$0xff] %v4235_v22  ;;  %v4237_v62 = vpop.f32.mrb[50].mxu0  ;;  %v3097_v41 = vpop.eup %3096  ;;  %v2144_v7 = vadd.f32 %v4130_v49, %v2097_v44  ;;  %v2110_v58 = vmul.f32 %v3095_v20, %v4029_v26  ;;  %3116 = vpow2.f32 %v2648_v51  ;;  %v4992_v20 = vld [vmem:[#allocation11_spill] sm:$0xff] }
 0x265   : > { %4989 = vst [vmem:[#allocation36_spill] sm:$0xff] %v4237_v62  ;;  %v4242_v17 = vpop.f32.mrb[43].mxu1  ;;  %v4244_v5 = vpop.f32.mrb[51].mxu0  ;;  %v2170_v50 = vadd.f32 %v4137_v13, %v2099_v30  ;;  %v2112_v38 = vmul.f32 %v3097_v41, %v4033_v23  ;;  %3118 = vpow2.f32 %v2659_v61  ;;  %v4249_v62 = vmul.f32 -1.442695, %v4216_v24  ;;  %v4993_v13 = vld [vmem:[#allocation14_spill] sm:$0xff] }
 0x266   : > { %4990 = vst [vmem:[#allocation37_spill] sm:$0xff] %v4242_v17  ;;  %4991 = vst [vmem:[#allocation38_spill] sm:$0xff] %v4244_v5  ;;  %v3099_v53 = vpop.eup %3098  ;;  %v2132_v49 = vadd.f32 %v4144_v8, %v2110_v58  ;;  %3120 = vpow2.f32 %v2661_v55  ;;  %v4255_v51 = vadd.f32 %v4992_v20, %v4012_v25  ;;  %v4260_v23 = vmul.f32 -1.442695, %v4233_v37 }
 0x267   : > { %v3101_v22 = vpop.eup %3100  ;;  %v2111_v26 = vmul.f32 %v3099_v53, %v4041_v32  ;;  %v2158_v5 = vadd.f32 %v4146_v40, %v2112_v38  ;;  %3122 = vpow2.f32 %v2660_v0  ;;  %v4994_v32 = vld [vmem:[#allocation12_spill] sm:$0xff]  ;;  %v4267_v38 = vpop.f32.mrb[44].mxu1 }
 0x268   : > { %v3103_v44 = vpop.eup %3102  ;;  %v2113_v30 = vmul.f32 %v3101_v22, %v4993_v13  ;;  %v2133_v41 = vrot.slane %v2132_v49, 4  ;;  %3124 = vpow2.f32 %v2662_v4  ;;  %v4264_v8 = vadd.f32 %v4994_v32, %v3999_v60  ;;  %4995 = vst [vmem:[#allocation11_spill] sm:$0xff] %v4267_v38  ;;  %v4269_v40 = vpop.f32.mrb[52].mxu0 }
 0x269   : > { %v3105_v61 = vpop.eup %3104  ;;  %v2145_v17 = vadd.f32 %v2144_v7, %v2111_v26  ;;  %v2159_v58 = vrot.slane %v2158_v5, 4  ;;  %v2016_v20 = vmul.f32 %v3103_v44, %v4053_v35  ;;  %3126 = vpow2.f32 %v2673_v27  ;;  %4996 = vst [vmem:[#allocation14_spill] sm:$0xff] %v4269_v40  ;;  %v4997_v7 = vld [vmem:[#allocation17_spill] sm:$0xff]  ;;  %v4274_v26 = vpop.f32.mrb[45].mxu1 }
 0x26a   : > { %v3107_v55 = vpop.eup %3106  ;;  %v2171_v53 = vadd.f32 %v2170_v50, %v2113_v30  ;;  %v2134_v22 = vadd.f32 %v2133_v41, %v2132_v49  ;;  %v2018_v4 = vmul.f32 %v3105_v61, %v4997_v7  ;;  %3128 = vpow2.f32 %v2675_v14  ;;  %4998 = vst [vmem:[#allocation12_spill] sm:$0xff] %v4274_v26  ;;  %v4276_v32 = vpop.f32.mrb[53].mxu0 }
 0x26b   : > { %v4271_v0 = vpop.eup %3108  ;;  %v2146_v13 = vrot.slane %v2145_v17, 4  ;;  %4999 = vst [vmem:[#allocation17_spill] sm:$0xff] %v4276_v32  ;;  %v2160_v50 = vadd.f32 %v2159_v58, %v2158_v5  ;;  %v2017_v35 = vmul.f32 %v3107_v55, %v4062_v16  ;;  %3130 = vpow2.f32 %v2674_v19  ;;  %v4279_v27 = vpop.f32.mrb[46].mxu1 }
 0x26c   : > { %v3111_v37 = vpop.eup %3110  ;;  %v2172_v30 = vrot.slane %v2171_v53, 4  ;;  %5000 = vst [vmem:[#allocation39_spill] sm:$0xff] %v4279_v27  ;;  %v4281_v44 = vpop.f32.mrb[54].mxu0  ;;  %v2135_v49 = vrot.slane %v2134_v22, 2  ;;  %3132 = vpow2.f32 %v2676_v21 }
 0x26d   : > { %5001 = vst [vmem:[#allocation40_spill] sm:$0xff] %v4281_v44  ;;  %v3113_v40 = vpop.eup %3112  ;;  %v2147_v41 = vadd.f32 %v2146_v13, %v2145_v17  ;;  %v2030_v61 = vmul.f32 %v3111_v37, %v4097_v9  ;;  %v4284_v14 = vpop.f32.mrb[47].mxu1  ;;  %v2161_v5 = vrot.slane %v2160_v50, 2  ;;  %3134 = vpow2.f32 %v2687_v36 }
 0x26e   : > { %5002 = vst [vmem:[#allocation41_spill] sm:$0xff] %v4284_v14  ;;  %v4286_v7 = vpop.f32.mrb[55].mxu0  ;;  %v3115_v32 = vpop.eup %3114  ;;  %v2173_v58 = vadd.f32 %v2172_v30, %v2171_v53  ;;  %v2032_v16 = vmul.f32 %v3113_v40, %v4107_v34  ;;  %v2136_v55 = vadd.f32 %v2135_v49, %v2134_v22 }
 0x26f   : > { %5003 = vst [vmem:[#allocation42_spill] sm:$0xff] %v4286_v7  ;;  %v3117_v19 = vpop.eup %3116  ;;  %v2148_v27 = vrot.slane %v2147_v41, 2  ;;  %v4289_v44 = vadd.f32 %v2030_v61, %v2016_v20  ;;  %v2031_v17 = vmul.f32 %v3115_v32, %v4112_v3  ;;  %v2162_v9 = vadd.f32 %v2161_v5, %v2160_v50  ;;  %v4296_v30 = vpop.f32.mrb[56].mxu0 }
 0x270   : > { %v3119_v13 = vpop.eup %3118  ;;  %v2174_v37 = vrot.slane %v2173_v58, 2  ;;  %v4292_v21 = vadd.f32 %v2032_v16, %v2018_v4  ;;  %v1697_v14 = vadd.f32 1.0, %v3117_v19  ;;  %v2137_v26 = vrot.slane %v2136_v55, 1  ;;  %v4298_v3 = vpop.f32.mrb[48].mxu1 }
 0x271   : > { %v3121_v7 = vpop.eup %3120  ;;  %v2149_v38 = vadd.f32 %v2148_v27, %v2147_v41  ;;  %v4294_v53 = vadd.f32 %v2031_v17, %v2017_v35  ;;  %v1708_v34 = vadd.f32 1.0, %v3119_v13  ;;  %v2163_v40 = vrot.slane %v2162_v9, 1  ;;  %5004 = vst [vmem:[#allocation43_spill] sm:$0xff] %v4298_v3  ;;  %v4300_v61 = vpop.f32.mrb[57].mxu0 }
 0x272   : > { %v3123_v36 = vpop.eup %3122  ;;  %v2175_v22 = vadd.f32 %v2174_v37, %v2173_v58  ;;  %3136 = vrcp.f32 %v1697_v14  ;;  %v1710_v20 = vadd.f32 1.0, %v3121_v7  ;;  %v2138_v50 = vadd.f32 %v2137_v26, %v2136_v55  ;;  %5005 = vst [vmem:[#allocation44_spill] sm:$0xff] %v4300_v61  ;;  %v4302_v27 = vpop.f32.mrb[49].mxu1  ;;  %v5009_v55 = vld [vmem:[#allocation13_spill] sm:$0xff] }
 0x273   : > { %v3125_v32 = vpop.eup %3124  ;;  %v2150_v4 = vrot.slane %v2149_v38, 1  ;;  %3138 = vrcp.f32 %v1708_v34  ;;  %v1709_v49 = vadd.f32 1.0, %v3123_v36  ;;  %5006 = vst [vmem:[#allocation45_spill] sm:$0xff] %v4302_v27  ;;  %v2164_v41 = vadd.f32 %v2163_v40, %v2162_v9  ;;  %v4304_v14 = vpop.f32.mrb[58].mxu0  ;;  %v5012_v40 = vld [vmem:[#allocation15_spill] sm:$0xff] }
 0x274   : > { %v3127_v35 = vpop.eup %3126  ;;  %v2176_v5 = vrot.slane %v2175_v22, 1  ;;  %3140 = vrcp.f32 %v1710_v20  ;;  %v1711_v58 = vadd.f32 1.0, %v3125_v32  ;;  %5007 = vst [vmem:[#allocation46_spill] sm:$0xff] %v4304_v14  ;;  %v4306_v7 = vpop.f32.mrb[50].mxu1  ;;  %v4310_v17 = vadd.f32 %v5009_v55, %v4002_v28 }
 0x275   : > { %5008 = vst [vmem:[#allocation47_spill] sm:$0xff] %v4306_v7  ;;  %v3129_v16 = vpop.eup %3128  ;;  %v2151_v19 = vadd.f32 %v2150_v4, %v2149_v38  ;;  %3142 = vrcp.f32 %v1709_v49  ;;  %v1722_v26 = vadd.f32 1.0, %v3127_v35  ;;  %v4312_v13 = vpop.f32.mrb[59].mxu0  ;;  %v4318_v20 = vadd.f32 %v5012_v40, %v4007_v29  ;;  %v5013_v49 = vld [vmem:[#allocation16_spill] sm:$0xff] }
 0x276   : > { %5010 = vst [vmem:[#allocation13_spill] sm:$0xff] %v4312_v13  ;;  %v4314_v37 = vpop.f32.mrb[51].mxu1  ;;  %v3131_v9 = vpop.eup %3130  ;;  %v2177_v34 = vadd.f32 %v2176_v5, %v2175_v22  ;;  %3144 = vrcp.f32 %v1711_v58  ;;  %v1724_v36 = vadd.f32 1.0, %v3129_v16  ;;  %v4322_v35 = vadd.f32 %v5013_v49, %v4012_v25  ;;  %v4331_v5 = vld [vmem:[%s4929_s4 + $0x8] sm:$0x3f] }
 0x277   : > { %5011 = vst [vmem:[#allocation48_spill] sm:$0xff] %v4314_v37  ;;  %v3133_v32 = vpop.eup %3132  ;;  %v2322_v38 = vcombine.low %v2138_v50, %v2151_v19  ;;  %3146 = vrcp.f32 %v1722_v26  ;;  %v1723_v4 = vadd.f32 1.0, %v3131_v9  ;;  %v4326_v22 = vadd.f32 %v4072_v63, %v3999_v60  ;;  %v5014_v63 = vld [vmem:[#allocation18_spill] sm:$0xff]  ;;  %v4345_v9 = vpop.f32.mrb[52].mxu1 }
 0x278   : > { %v3135_v55 = vpop.eup %3134  ;;  %v2323_v13 = vcombine.low %v2164_v41, %v2177_v34  ;;  %3148 = vrcp.f32 %v1724_v36  ;;  %v1725_v37 = vadd.f32 1.0, %v3133_v32  ;;  %v2690_v16 = vmul.f32 -1.442695, %v4255_v51  ;;  %5015 = vst [vmem:[#allocation15_spill] sm:$0xff] %v4345_v9 }
 0x279   : > { %v4334_v50 = vrot.slane %v2322_v38, %v4166_v46  ;;  %3150 = vrcp.f32 %v1723_v4  ;;  %v1736_v58 = vadd.f32 1.0, %v3135_v55  ;;  %v2701_v19 = vmul.f32 -1.442695, %v4264_v8 }
 0x27a   : > { %v4338_v41 = vrot.slane %v2323_v13, %v4166_v46  ;;  %3152 = vrcp.f32 %v1725_v37  ;;  %v4343_v26 = vadd.f32 %v5014_v63, %v4002_v28  ;;  %v2703_v34 = vmul.f32 -1.442695, %v4310_v17  ;;  %v4354_v13 = vpop.f32.mrb[53].mxu1 }
 0x27b   : > { %3154 = vrcp.f32 %v1736_v58  ;;  %v2702_v36 = vmul.f32 -1.442695, %v4318_v20  ;;  %v5016_v40 = vsub.s32 0, %v3788_v56  ;;  %5017 = vst [vmem:[#allocation16_spill] sm:$0xff] %v4354_v13  ;;  %v2704_v4 = vmul.f32 -1.442695, %v4322_v35 }
 0x27c   : > { %v3137_v37 = vpop.eup %3136  ;;  %3156 = vpow2.f32 %v4249_v62  ;;  %v2715_v49 = vmul.f32 -1.442695, %v4326_v22  ;;  %v4361_v55 = vpop.f32.mrb[54].mxu1  ;;  %v2019_v63 = vmul.f32 %v4271_v0, %v4087_v42  ;;  %v4369_v13 = vadd.f32 %v4079_v10, %v4007_v29 }
 0x27d   : > { %v4352_v32 = vrot.slane %v4331_v5, %v5016_v40  ;;  %5018 = vst [vmem:[#allocation18_spill] sm:$0xff] %v4361_v55  ;;  %v3139_v58 = vpop.eup %3138  ;;  %v2033_v40 = vmul.f32 %v3137_v37, %v4151_v12  ;;  %3158 = vpow2.f32 %v4260_v23  ;;  %v4371_v38 = vpop.f32.mrb[55].mxu1  ;;  %v2717_v55 = vmul.f32 -1.442695, %v4343_v26 }
 0x27e   : > { %5019 = vst [vmem:[#allocation49_spill] sm:$0xff] %v4371_v38  ;;  %v3141_v62 = vpop.eup %3140  ;;  %v2044_v9 = vmul.f32 %v3139_v58, %v4155_v57  ;;  %3160 = vpow2.f32 %v2690_v16  ;;  %v4377_v7 = vadd.f32 %v4081_v18, %v4012_v25  ;;  %v4382_v10 = vadd.f32 %v4089_v2, %v3999_v60 }
 0x27f   : > { %v3143_v42 = vpop.eup %3142  ;;  %v2217_v12 = vadd.f32 %v2033_v40, %v2019_v63  ;;  %v2046_v23 = vmul.f32 %v3141_v62, %v4159_v33  ;;  %3162 = vpow2.f32 %v2701_v19  ;;  %v4388_v16 = vadd.f32 %v4091_v31, %v4002_v28 }
 0x280   : > { %v3145_v0 = vpop.eup %3144  ;;  %v2179_v37 = vadd.f32 %v4289_v44, %v2044_v9  ;;  %v2045_v57 = vmul.f32 %v3143_v42, %v4173_v47  ;;  %3164 = vpow2.f32 %v2703_v34  ;;  %v2716_v19 = vmul.f32 -1.442695, %v4369_v13  ;;  %v4396_v9 = vpop.f32.mrb[56].mxu1 }
 0x281   : > { %v3147_v18 = vpop.eup %3146  ;;  %v2205_v58 = vadd.f32 %v4292_v21, %v2046_v23  ;;  %v2047_v33 = vmul.f32 %v3145_v0, %v4182_v52  ;;  %3166 = vpow2.f32 %v2702_v36  ;;  %v2718_v47 = vmul.f32 -1.442695, %v4377_v7  ;;  %5020 = vst [vmem:[#allocation50_spill] sm:$0xff] %v4396_v9  ;;  %v4400_v21 = vpop.f32.mrb[57].mxu1  ;;  %v5035_v9 = vld [vmem:[#allocation34_spill] sm:$0xff] }
 0x282   : > { %v3149_v60 = vpop.eup %3148  ;;  %v2192_v2 = vadd.f32 %v4294_v53, %v2045_v57  ;;  %v2058_v44 = vmul.f32 %v3147_v18, %v4191_v43  ;;  %3168 = vpow2.f32 %v2704_v4  ;;  %v2729_v52 = vmul.f32 -1.442695, %v4382_v10  ;;  %5021 = vst [vmem:[#allocation51_spill] sm:$0xff] %v4400_v21  ;;  %v4404_v4 = vpop.f32.mrb[58].mxu1 }
 0x283   : > { %v3151_v28 = vpop.eup %3150  ;;  %v2218_v31 = vadd.f32 %v2217_v12, %v2047_v33  ;;  %v2060_v34 = vmul.f32 %v3149_v60, %v4197_v15  ;;  %3170 = vpow2.f32 %v2715_v49  ;;  %v2731_v43 = vmul.f32 -1.442695, %v4388_v16  ;;  %5022 = vst [vmem:[#allocation52_spill] sm:$0xff] %v4404_v4  ;;  %v4414_v12 = vpop.f32.mrb[59].mxu1 }
 0x284   : > { %v3153_v36 = vpop.eup %3152  ;;  %v2180_v63 = vadd.f32 %v2179_v37, %v2058_v44  ;;  %v2059_v53 = vmul.f32 %v3151_v28, %v4201_v6  ;;  %3172 = vpow2.f32 %v2717_v55  ;;  %v5023_v15 = vsub.s32 2, %v3788_v56  ;;  %5024 = vst [vmem:[#allocation53_spill] sm:$0xff] %v4414_v12 }
 0x285   : > { %v3155_v40 = vpop.eup %3154  ;;  %v4406_v62 = vadd.f32 %v2205_v58, %v2060_v34  ;;  %v2061_v42 = vmul.f32 %v3153_v36, %v4206_v1  ;;  %3174 = vpow2.f32 %v2716_v19  ;;  %v5025_v0 = vsub.s32 1, %v3788_v56 }
 0x286   : > { %v4412_v49 = vrot.slane %v4331_v5, %v5023_v15  ;;  %v3157_v23 = vpop.eup %3156  ;;  %v4416_v6 = vadd.f32 %v2192_v2, %v2059_v53  ;;  %v2072_v55 = vmul.f32 %v3155_v40, %v4211_v11  ;;  %3176 = vpow2.f32 %v2718_v47  ;;  %v5026_v11 = vld [vmem:[#allocation19_spill] sm:$0xff] }
 0x287   : > { %v4422_v37 = vrot.slane %v4331_v5, %v5025_v0  ;;  %v3159_v1 = vpop.eup %3158  ;;  %v4424_v57 = vadd.f32 %v2218_v31, %v2061_v42  ;;  %v1738_v18 = vadd.f32 1.0, %v3157_v23  ;;  %3178 = vpow2.f32 %v2729_v52 }
 0x288   : > { %v4428_v58 = vadd.f32 %v4099_v39, %v4007_v29  ;;  %v3161_v33 = vpop.eup %3160  ;;  %v4430_v19 = vadd.f32 %v2180_v63, %v2072_v55  ;;  %v1737_v60 = vadd.f32 1.0, %v3159_v1  ;;  %3180 = vpow2.f32 %v2731_v43  ;;  %v5028_v1 = vld [vmem:[#allocation9_spill] sm:$0xff] }
 0x289   : > { %v4434_v2 = vadd.f32 %v5026_v11, %v4012_v25  ;;  %v3163_v44 = vpop.eup %3162  ;;  %3182 = vrcp.f32 %v1738_v18  ;;  %v1739_v47 = vadd.f32 1.0, %v3161_v33  ;;  %v4438_v28 = vadd.f32 %v4120_v59, %v4352_v32 }
 0x28a   : > { %v4442_v29 = vadd.f32 %v4122_v54, %v4412_v49  ;;  %v3165_v39 = vpop.eup %3164  ;;  %3184 = vrcp.f32 %v1737_v60  ;;  %v1750_v31 = vadd.f32 1.0, %v3163_v44  ;;  %v5027_v34 = vsub.s32 3, %v3788_v56  ;;  %v5029_v44 = vld [vmem:[#allocation10_spill] sm:$0xff] }
 0x28b   : > { %v3167_v25 = vpop.eup %3166  ;;  %3186 = vrcp.f32 %v1739_v47  ;;  %v1752_v36 = vadd.f32 1.0, %v3165_v39  ;;  %v4451_v63 = vadd.f32 %v4126_v45, %v4422_v37  ;;  %v2730_v54 = vmul.f32 -1.442695, %v4428_v58 }
 0x28c   : > { %v4447_v52 = vrot.slane %v4331_v5, %v5027_v34  ;;  %v3169_v59 = vpop.eup %3168  ;;  %3188 = vrcp.f32 %v1750_v31  ;;  %v1751_v53 = vadd.f32 1.0, %v3167_v25  ;;  %v2732_v43 = vmul.f32 -1.442695, %v4434_v2  ;;  %v5030_v34 = vld [vmem:[#allocation20_spill] sm:$0xff]  ;;  %v5031_v25 = vld [vmem:[#allocation21_spill] sm:$0xff] }
 0x28d   : > { %v3171_v40 = vpop.eup %3170  ;;  %3190 = vrcp.f32 %v1752_v36  ;;  %v1753_v42 = vadd.f32 1.0, %v3169_v59  ;;  %v2635_v15 = vmul.f32 -1.442695, %v4438_v28  ;;  %v2637_v23 = vmul.f32 -1.442695, %v4442_v29 }
 0x28e   : > { %v3173_v55 = vpop.eup %3172  ;;  %3192 = vrcp.f32 %v1751_v53  ;;  %v1764_v0 = vadd.f32 1.0, %v3171_v40  ;;  %v4459_v45 = vadd.f32 %v4128_v48, %v4447_v52  ;;  %v4463_v18 = vadd.f32 %v5028_v1, %v4352_v32  ;;  %v5032_v40 = vld [vmem:[#allocation22_spill] sm:$0xff] }
 0x28f   : > { %v3175_v33 = vpop.eup %3174  ;;  %3194 = vrcp.f32 %v1753_v42  ;;  %v1766_v60 = vadd.f32 1.0, %v3173_v55  ;;  %v2636_v11 = vmul.f32 -1.442695, %v4451_v63  ;;  %v4468_v47 = vadd.f32 %v5029_v44, %v4412_v49  ;;  %v5033_v55 = vld [vmem:[#allocation23_spill] sm:$0xff] }
 0x290   : > { %v3177_v39 = vpop.eup %3176  ;;  %3196 = vrcp.f32 %v1764_v0  ;;  %v1765_v31 = vadd.f32 1.0, %v3175_v33  ;;  %v4472_v48 = vadd.f32 %v5030_v34, %v4422_v37  ;;  %v4476_v36 = vadd.f32 %v5031_v25, %v4447_v52  ;;  %v5034_v34 = vld [vmem:[#allocation24_spill] sm:$0xff] }
 0x291   : > { %v3179_v59 = vpop.eup %3178  ;;  %3198 = vrcp.f32 %v1766_v60  ;;  %v1767_v53 = vadd.f32 1.0, %v3177_v39  ;;  %v4480_v42 = vadd.f32 %v5032_v40, %v4352_v32  ;;  %v4484_v1 = vadd.f32 %v5033_v55, %v4412_v49 }
 0x292   : > { %v3181_v0 = vpop.eup %3180  ;;  %3200 = vrcp.f32 %v1765_v31  ;;  %v1778_v33 = vadd.f32 1.0, %v3179_v59  ;;  %v2638_v44 = vmul.f32 -1.442695, %v4459_v45  ;;  %v4489_v25 = vadd.f32 %v5034_v34, %v4422_v37 }
 0x293   : > { %v3183_v12 = vpop.eup %3182  ;;  %3202 = vrcp.f32 %v1767_v53  ;;  %v1780_v60 = vadd.f32 1.0, %v3181_v0  ;;  %v2649_v39 = vmul.f32 -1.442695, %v4463_v18  ;;  %v2651_v40 = vmul.f32 -1.442695, %v4468_v47 }
 0x294   : > { %v3185_v4 = vpop.eup %3184  ;;  %v2074_v55 = vmul.f32 %v3183_v12, %v4216_v24  ;;  %3204 = vrcp.f32 %v1778_v33  ;;  %v2650_v31 = vmul.f32 -1.442695, %v4472_v48  ;;  %v2652_v59 = vmul.f32 -1.442695, %v4476_v36 }
 0x295   : > { %v3187_v21 = vpop.eup %3186  ;;  %v2073_v38 = vmul.f32 %v3185_v4, %v5035_v9  ;;  %3206 = vrcp.f32 %v1780_v60  ;;  %v2663_v34 = vmul.f32 -1.442695, %v4480_v42  ;;  %v2665_v53 = vmul.f32 -1.442695, %v4484_v1  ;;  %v5036_v9 = vld [vmem:[#allocation25_spill] sm:$0xff] }
 0x296   : > { %v3189_v0 = vpop.eup %3188  ;;  %v2207_v14 = vadd.f32 %v4406_v62, %v2074_v55  ;;  %v2075_v27 = vmul.f32 %v3187_v21, %v4255_v51  ;;  %3208 = vpow2.f32 %v2730_v54  ;;  %v2664_v24 = vmul.f32 -1.442695, %v4489_v25  ;;  %v5037_v51 = vld [vmem:[#allocation26_spill] sm:$0xff] }
 0x297   : > { %v3191_v12 = vpop.eup %3190  ;;  %v2194_v33 = vadd.f32 %v4416_v6, %v2073_v38  ;;  %v2086_v61 = vmul.f32 %v3189_v0, %v4264_v8  ;;  %3210 = vpow2.f32 %v2732_v43  ;;  %v4506_v4 = vadd.f32 %v5036_v9, %v4447_v52  ;;  %v5038_v6 = vld [vmem:[#allocation27_spill] sm:$0xff] }
 0x298   : > { %v3193_v60 = vpop.eup %3192  ;;  %v2220_v3 = vadd.f32 %v4424_v57, %v2075_v27  ;;  %v2088_v62 = vmul.f32 %v3191_v12, %v4310_v17  ;;  %3212 = vpow2.f32 %v2635_v15  ;;  %v4512_v21 = vadd.f32 %v5037_v51, %v4352_v32  ;;  %v5039_v17 = vld [vmem:[#allocation28_spill] sm:$0xff] }
 0x299   : > { %v3195_v54 = vpop.eup %3194  ;;  %v2182_v38 = vadd.f32 %v4430_v19, %v2086_v61  ;;  %v2087_v8 = vmul.f32 %v3193_v60, %v4318_v20  ;;  %3214 = vpow2.f32 %v2637_v23  ;;  %v4518_v43 = vadd.f32 %v5038_v6, %v4412_v49  ;;  %v5040_v20 = vld [vmem:[#allocation29_spill] sm:$0xff] }
 0x29a   : > { %v3197_v55 = vpop.eup %3196  ;;  %v2208_v0 = vadd.f32 %v2207_v14, %v2088_v62  ;;  %v2089_v27 = vmul.f32 %v3195_v54, %v4322_v35  ;;  %3216 = vpow2.f32 %v2636_v11  ;;  %v4523_v57 = vadd.f32 %v5039_v17, %v4422_v37 }
 0x29b   : > { %v3199_v15 = vpop.eup %3198  ;;  %v2195_v12 = vadd.f32 %v2194_v33, %v2087_v8  ;;  %v2100_v61 = vmul.f32 %v3197_v55, %v4326_v22  ;;  %3218 = vpow2.f32 %v2638_v44  ;;  %v4528_v19 = vadd.f32 %v5040_v20, %v4447_v52 }
 0x29c   : > { %v3201_v23 = vpop.eup %3200  ;;  %v2221_v9 = vadd.f32 %v2220_v3, %v2089_v27  ;;  %v2102_v14 = vmul.f32 %v3199_v15, %v4343_v26  ;;  %3220 = vpow2.f32 %v2649_v39  ;;  %v4532_v35 = vmul.f32 -1.442695, %v4506_v4 }
 0x29d   : > { %v3203_v11 = vpop.eup %3202  ;;  %v2183_v60 = vadd.f32 %v2182_v38, %v2100_v61  ;;  %v2101_v62 = vmul.f32 %v3201_v23, %v4369_v13  ;;  %3222 = vpow2.f32 %v2651_v40  ;;  %v4536_v22 = vmul.f32 -1.442695, %v4512_v21 }
 0x29e   : > { %v3205_v44 = vpop.eup %3204  ;;  %v2209_v33 = vadd.f32 %v2208_v0, %v2102_v14  ;;  %v2103_v51 = vmul.f32 %v3203_v11, %v4377_v7  ;;  %3224 = vpow2.f32 %v2650_v31  ;;  %v4540_v3 = vmul.f32 -1.442695, %v4518_v43  ;;  %v5041_v7 = vld [vmem:[#allocation30_spill] sm:$0xff] }
 0x29f   : > { %v3207_v26 = vpop.eup %3206  ;;  %v4542_v39 = vadd.f32 %v2195_v12, %v2101_v62  ;;  %v2114_v54 = vmul.f32 %v3205_v44, %v4382_v10  ;;  %3226 = vpow2.f32 %v2652_v59  ;;  %v4546_v13 = vmul.f32 -1.442695, %v4523_v57  ;;  %v5042_v10 = vld [vmem:[#allocation31_spill] sm:$0xff] }
 0x2a0   : > { %v3209_v40 = vpop.eup %3208  ;;  %v4548_v38 = vadd.f32 %v2221_v9, %v2103_v51  ;;  %v2116_v8 = vmul.f32 %v3207_v26, %v4388_v16  ;;  %3228 = vpow2.f32 %v2663_v34  ;;  %v4553_v31 = vadd.f32 %v5041_v7, %v4352_v32  ;;  %v5044_v51 = vld [vmem:[#allocation32_spill] sm:$0xff]  ;;  %v5045_v7 = vld [vmem:[#allocation33_spill] sm:$0xff] }
 0x2a1   : > { %v3211_v6 = vpop.eup %3210  ;;  %v2184_v55 = vadd.f32 %v2183_v60, %v2114_v54  ;;  %v1779_v0 = vadd.f32 1.0, %v3209_v40  ;;  %3230 = vpow2.f32 %v2665_v53  ;;  %v4557_v59 = vadd.f32 %v5042_v10, %v4412_v49 }
 0x2a2   : > { %v3213_v27 = vpop.eup %3212  ;;  %v5043_v17 = vcombine.low %v4334_v50, %v4338_v41  ;;  %v2210_v16 = vadd.f32 %v2209_v33, %v2116_v8  ;;  %v1781_v34 = vadd.f32 1.0, %v3211_v6  ;;  %3232 = vpow2.f32 %v2664_v24 }
 0x2a3   : > { %v3215_v12 = vpop.eup %3214  ;;  %v2185_v61 = vrot.slane %v2184_v55, 4  ;;  %3234 = vrcp.f32 %v1779_v0  ;;  %v1684_v20 = vadd.f32 1.0, %v3213_v27  ;;  %v4566_v53 = vmul.f32 -1.442695, %v4528_v19  ;;  %v5046_v27 = vld [vmem:[#allocation35_spill] sm:$0xff] }
 0x2a4   : > { %v4563_v15 = vrot.slane %v5043_v17, %v4166_v46  ;;  %v3217_v23 = vpop.eup %3216  ;;  %v2211_v9 = vrot.slane %v2210_v16, 4  ;;  %3236 = vrcp.f32 %v1781_v34  ;;  %v1686_v14 = vadd.f32 1.0, %v3215_v12 }
 0x2a5   : > { %v4569_v11 = vmul.f32 -1.442695, %v4553_v31  ;;  %v3219_v50 = vpop.eup %3218  ;;  %v2186_v41 = vadd.f32 %v2185_v61, %v2184_v55  ;;  %3238 = vrcp.f32 %v1684_v20  ;;  %v1685_v60 = vadd.f32 1.0, %v3217_v23  ;;  %v5048_v61 = vld [vmem:[#allocation36_spill] sm:$0xff] }
 0x2a6   : > { %v4572_v24 = vmul.f32 -1.442695, %v4557_v59  ;;  %v3221_v62 = vpop.eup %3220  ;;  %v2212_v44 = vadd.f32 %v2211_v9, %v2210_v16  ;;  %3240 = vrcp.f32 %v1686_v14  ;;  %v1687_v33 = vadd.f32 1.0, %v3219_v50  ;;  %v5050_v50 = vld [vmem:[#allocation37_spill] sm:$0xff] }
 0x2a7   : > { %v4576_v26 = vadd.f32 %v5044_v51, %v4422_v37  ;;  %v3223_v54 = vpop.eup %3222  ;;  %v2187_v40 = vrot.slane %v2186_v41, 2  ;;  %3242 = vrcp.f32 %v1685_v60  ;;  %v1698_v8 = vadd.f32 1.0, %v3221_v62 }
 0x2a8   : > { %v4580_v6 = vadd.f32 %v5045_v7, %v4447_v52  ;;  %v3225_v55 = vpop.eup %3224  ;;  %v2213_v0 = vrot.slane %v2212_v44, 2  ;;  %3244 = vrcp.f32 %v1687_v33  ;;  %v1700_v10 = vadd.f32 1.0, %v3223_v54 }
 0x2a9   : > { %v4584_v17 = vadd.f32 %v5046_v27, %v4352_v32  ;;  %v3227_v16 = vpop.eup %3226  ;;  %v2188_v34 = vadd.f32 %v2187_v40, %v2186_v41  ;;  %3246 = vrcp.f32 %v1698_v8  ;;  %v1699_v12 = vadd.f32 1.0, %v3225_v55  ;;  %v5052_v41 = vld [vmem:[#allocation38_spill] sm:$0xff] }
 0x2aa   : > { %v4588_v20 = vadd.f32 %v5048_v61, %v4412_v49  ;;  %v3229_v23 = vpop.eup %3228  ;;  %v2214_v9 = vadd.f32 %v2213_v0, %v2212_v44  ;;  %3248 = vrcp.f32 %v1700_v10  ;;  %v1701_v14 = vadd.f32 1.0, %v3227_v16 }
 0x2ab   : > { %5047 = vst [vmem:[#allocation19_spill] sm:$0xff] %v4584_v17  ;;  %v4592_v60 = vadd.f32 %v5050_v50, %v4422_v37  ;;  %v3231_v62 = vpop.eup %3230  ;;  %3250 = vrcp.f32 %v1699_v12  ;;  %v1712_v33 = vadd.f32 1.0, %v3229_v23  ;;  %v2692_v51 = vmul.f32 -1.442695, %v4576_v26 }
 0x2ac   : > { %5049 = vst [vmem:[#allocation9_spill] sm:$0xff] %v4588_v20  ;;  %v4597_v54 = vadd.f32 %v5052_v41, %v4447_v52  ;;  %v3233_v40 = vpop.eup %3232  ;;  %3252 = vrcp.f32 %v1701_v14  ;;  %v1714_v8 = vadd.f32 1.0, %v3231_v62  ;;  %v2694_v44 = vmul.f32 -1.442695, %v4580_v6  ;;  %v5054_v41 = vld [vmem:[#allocation11_spill] sm:$0xff] }
 0x2ad   : > { %5051 = vst [vmem:[#allocation10_spill] sm:$0xff] %v4592_v60  ;;  %v4601_v7 = vmul.f32 -1.442695, %v4584_v17  ;;  %v3235_v55 = vpop.eup %3234  ;;  %v2189_v0 = vrot.slane %v2188_v34, 1  ;;  %v2215_v10 = vrot.slane %v2214_v9, 1  ;;  %3254 = vrcp.f32 %v1712_v33 }
 0x2ae   : > { %5053 = vst [vmem:[#allocation20_spill] sm:$0xff] %v4597_v54  ;;  %v1713_v27 = vadd.f32 1.0, %v3233_v40  ;;  %v3237_v16 = vpop.eup %3236  ;;  %v2115_v12 = vmul.f32 %v3235_v55, %v4428_v58  ;;  %3256 = vrcp.f32 %v1714_v8  ;;  %v2707_v61 = vmul.f32 -1.442695, %v4588_v20  ;;  %v5055_v8 = vld [vmem:[#allocation14_spill] sm:$0xff] }
 0x2af   : > { %v4606_v23 = vmul.f32 -1.442695, %v4592_v60  ;;  %v3239_v14 = vpop.eup %3238  ;;  %v2117_v50 = vmul.f32 %v3237_v16, %v4434_v2  ;;  %v4610_v62 = vmul.f32 -1.442695, %v4597_v54  ;;  %v4614_v33 = vadd.f32 %v5054_v41, %v4352_v32  ;;  %v5056_v60 = vld [vmem:[#allocation12_spill] sm:$0xff] }
 0x2b0   : > { %3258 = vrcp.f32 %v1713_v27  ;;  %v3241_v40 = vpop.eup %3240  ;;  %v2197_v58 = vadd.f32 %v4542_v39, %v2115_v12  ;;  %v4620_v55 = vadd.f32 %v5055_v8, %v4412_v49  ;;  %v4624_v2 = vadd.f32 %v5056_v60, %v4422_v37 }
 0x2b1   : > { %3260 = vpow2.f32 %v4532_v35  ;;  %v3243_v27 = vpop.eup %3242  ;;  %v4626_v16 = vadd.f32 %v2189_v0, %v2188_v34  ;;  %v4628_v54 = vadd.f32 %v2215_v10, %v2214_v9  ;;  %v2223_v41 = vadd.f32 %v4548_v38, %v2117_v50 }
 0x2b2   : > { %3262 = vpow2.f32 %v4536_v22  ;;  %v3245_v39 = vpop.eup %3244  ;;  %v2198_v12 = vrot.slane %v2197_v58, 4  ;;  %v2020_v35 = vmul.f32 %v3239_v14, %v4438_v28  ;;  %v2022_v8 = vmul.f32 %v3241_v40, %v4442_v29 }
 0x2b3   : > { %3264 = vpow2.f32 %v4540_v3  ;;  %v3247_v20 = vpop.eup %3246  ;;  %v2224_v60 = vrot.slane %v2223_v41, 4  ;;  %v2021_v17 = vmul.f32 %v3243_v27, %v4451_v63  ;;  %v5057_v22 = vlaneseq }
 0x2b4   : > { %3266 = vpow2.f32 %v4546_v13  ;;  %v3249_v34 = vpop.eup %3248  ;;  %v2199_v9 = vadd.f32 %v2198_v12, %v2197_v58  ;;  %v2034_v38 = vmul.f32 %v3247_v20, %v4463_v18  ;;  %v2023_v3 = vmul.f32 %v3245_v39, %v4459_v45 }
 0x2b5   : > { %3268 = vpow2.f32 %v4566_v53  ;;  %vm4640_vm5 = vcmp.lt.s32.totalorder %v5057_v22, 768  ;;  %v3251_v28 = vpop.eup %3250  ;;  %v2225_v29 = vadd.f32 %v2224_v60, %v2223_v41  ;;  %v2036_v10 = vmul.f32 %v3249_v34, %v4468_v47 }
 0x2b6   : > { %3270 = vpow2.f32 %v4569_v11  ;;  %v3526_v63 = vmov 0.0   ;;  %v3253_v18 = vpop.eup %3252  ;;  %v2200_v13 = vrot.slane %v2199_v9, 2  ;;  %v2230_v53 = vadd.f32 %v2034_v38, %v2020_v35 }
 0x2b7   : > { %276 = vst.msk [vmem:[#allocation2 + $0x8] sm:$0x3f] %vm4640_vm5, %v3526_v63  ;;  %v2035_v20 = vmul.f32 %v3251_v28, %v4472_v48  ;;  %3272 = vpow2.f32 %v4572_v24  ;;  %v3255_v14 = vpop.eup %3254  ;;  %v2226_v50 = vrot.slane %v2225_v29, 2  ;;  %v2256_v40 = vadd.f32 %v2036_v10, %v2022_v8 }
 0x2b8   : > { %v2037_v45 = vmul.f32 %v3253_v18, %v4476_v36  ;;  %3274 = vpow2.f32 %v2692_v51  ;;  %v3257_v47 = vpop.eup %3256  ;;  %v2201_v58 = vadd.f32 %v2200_v13, %v2199_v9  ;;  %v2048_v27 = vmul.f32 %v3255_v14, %v4480_v42 }
 0x2b9   : > { %v2243_v11 = vadd.f32 %v2035_v20, %v2021_v17  ;;  %3276 = vpow2.f32 %v2694_v44  ;;  %v2227_v39 = vadd.f32 %v2226_v50, %v2225_v29  ;;  %v2050_v48 = vmul.f32 %v3257_v47, %v4484_v1 }
 0x2ba   : > { %v3259_v41 = vpop.eup %3258  ;;  %v4653_v12 = vadd.f32 %v2037_v45, %v2023_v3  ;;  %3278 = vpow2.f32 %v4601_v7  ;;  %v2202_v35 = vrot.slane %v2201_v58, 1  ;;  %v4657_v8 = vadd.f32 %v2230_v53, %v2048_v27  ;;  %v5061_v45 = vld [vmem:[#allocation39_spill] sm:$0xff]  ;;  %v5062_v27 = vld [vmem:[#allocation40_spill] sm:$0xff] }
 0x2bb   : > { %v3261_v24 = vpop.eup %3260  ;;  %v2049_v36 = vmul.f32 %v3259_v41, %v4489_v25  ;;  %3280 = vpow2.f32 %v2707_v61  ;;  %v2228_v17 = vrot.slane %v2227_v39, 1  ;;  %v4660_v60 = vadd.f32 %v2256_v40, %v2050_v48 }
 0x2bc   : > { %v3263_v51 = vpop.eup %3262  ;;  %v1715_v42 = vadd.f32 1.0, %v3261_v24  ;;  %3282 = vpow2.f32 %v4606_v23  ;;  %v2203_v34 = vadd.f32 %v2202_v35, %v2201_v58  ;;  %v4667_v25 = vmul.f32 -1.442695, %v4614_v33  ;;  %v5060_v23 = vld [vmem:[#allocation17_spill] sm:$0xff] }
 0x2bd   : > { %v3265_v44 = vpop.eup %3264  ;;  %v4663_v9 = vadd.f32 %v2243_v11, %v2049_v36  ;;  %v1726_v1 = vadd.f32 1.0, %v3263_v51  ;;  %3284 = vpow2.f32 %v4610_v62  ;;  %v2229_v38 = vadd.f32 %v2228_v17, %v2227_v39  ;;  %v5063_v35 = vld [vmem:[#allocation41_spill] sm:$0xff]  ;;  %v5064_v17 = vld [vmem:[#allocation42_spill] sm:$0xff] }
 0x2be   : > { %v3267_v7 = vpop.eup %3266  ;;  %3286 = vrcp.f32 %v1715_v42  ;;  %v1728_v22 = vadd.f32 1.0, %v3265_v44  ;;  %v2324_v28 = vcombine.low %v4626_v16, %v2203_v34  ;;  %v4672_v3 = vadd.f32 %v5060_v23, %v4447_v52 }
 0x2bf   : > { %v3269_v61 = vpop.eup %3268  ;;  %3288 = vrcp.f32 %v1726_v1  ;;  %v1727_v29 = vadd.f32 1.0, %v3267_v7  ;;  %v2325_v63 = vcombine.low %v4628_v54, %v2229_v38  ;;  %v2721_v18 = vmul.f32 -1.442695, %v4620_v55 }
 0x2c0   : > { %v3271_v10 = vpop.eup %3270  ;;  %3290 = vrcp.f32 %v1728_v22  ;;  %v1729_v62 = vadd.f32 1.0, %v3269_v61  ;;  %v2346_v53 = vrot.slane %v2324_v28, %v4166_v46  ;;  %v2720_v16 = vmul.f32 -1.442695, %v4624_v2 }
 0x2c1   : > { %v3273_v13 = vpop.eup %3272  ;;  %3292 = vrcp.f32 %v1727_v29  ;;  %v1740_v20 = vadd.f32 1.0, %v3271_v10  ;;  %v2353_v50 = vrot.slane %v2325_v63, %v4166_v46  ;;  %v4681_v54 = vadd.f32 %v5061_v45, %v4352_v32  ;;  %v5068_v45 = vld [vmem:[#allocation44_spill] sm:$0xff] }
 0x2c2   : > { %v3275_v14 = vpop.eup %3274  ;;  %3294 = vrcp.f32 %v1729_v62  ;;  %v1742_v40 = vadd.f32 1.0, %v3273_v13  ;;  %v2722_v11 = vmul.f32 -1.442695, %v4672_v3  ;;  %v4686_v41 = vadd.f32 %v5062_v27, %v4412_v49 }
 0x2c3   : > { %v3277_v47 = vpop.eup %3276  ;;  %3296 = vrcp.f32 %v1740_v20  ;;  %v1741_v58 = vadd.f32 1.0, %v3275_v14  ;;  %v2355_v48 = vcombine.low %v2346_v53, %v2353_v50  ;;  %v4690_v36 = vadd.f32 %v5063_v35, %v4422_v37 }
 0x2c4   : > { %v3279_v39 = vpop.eup %3278  ;;  %3298 = vrcp.f32 %v1742_v40  ;;  %v1743_v24 = vadd.f32 1.0, %v3277_v47  ;;  %v4695_v42 = vadd.f32 %v5064_v17, %v4447_v52  ;;  %v5065_v49 = vsub.s32 4, %v3788_v56 }
 0x2c5   : > { %v3281_v32 = vpop.eup %3280  ;;  %3300 = vrcp.f32 %v1741_v58  ;;  %v1754_v51 = vadd.f32 1.0, %v3279_v39  ;;  %v2369_v1 = vrot.slane %v2355_v48, %v4166_v46  ;;  %v2733_v7 = vmul.f32 -1.442695, %v4681_v54 }
 0x2c6   : > { %v4700_v44 = vrot.slane %v4331_v5, %v5065_v49  ;;  %v3283_v34 = vpop.eup %3282  ;;  %3302 = vrcp.f32 %v1743_v24  ;;  %v1756_v37 = vadd.f32 1.0, %v3281_v32  ;;  %v2735_v61 = vmul.f32 -1.442695, %v4686_v41 }
 0x2c7   : > { %v3285_v38 = vpop.eup %3284  ;;  %3304 = vrcp.f32 %v1754_v51  ;;  %v1755_v22 = vadd.f32 1.0, %v3283_v34  ;;  %v5066_v52 = vsub.s32 5, %v3788_v56  ;;  %v2370_v23 = vcombine.low %v4563_v15, %v2369_v1  ;;  %v5067_v15 = vld [vmem:[#allocation43_spill] sm:$0xff] }
 0x2c8   : > { %v3287_v29 = vpop.eup %3286  ;;  %3306 = vrcp.f32 %v1756_v37  ;;  %v1757_v10 = vadd.f32 1.0, %v3285_v38  ;;  %v2734_v63 = vmul.f32 -1.442695, %v4690_v36  ;;  %v2736_v53 = vmul.f32 -1.442695, %v4695_v42 }
 0x2c9   : > { %v4708_v28 = vrot.slane %v4331_v5, %v5066_v52  ;;  %v3289_v62 = vpop.eup %3288  ;;  %v2051_v13 = vmul.f32 %v3287_v29, %v4506_v4  ;;  %3308 = vrcp.f32 %v1755_v22  ;;  %v4720_v56 = vadd.f32 %v4296_v30, %v4700_v44 }
 0x2ca   : > { %v3291_v5 = vpop.eup %3290  ;;  %v2062_v20 = vmul.f32 %v3289_v62, %v4512_v21  ;;  %3310 = vrcp.f32 %v1757_v10  ;;  %v4725_v14 = vadd.f32 %v5067_v15, %v4700_v44  ;;  %v2426_v27 = vmul.f32 0.015625, %v2370_v23 }
 0x2cb   : > { %v3293_v50 = vpop.eup %3292  ;;  %v2270_v40 = vadd.f32 %v4653_v12, %v2051_v13  ;;  %v2064_v4 = vmul.f32 %v3291_v5, %v4518_v43  ;;  %3312 = vpow2.f32 %v4667_v25  ;;  %v4732_v47 = vadd.f32 %v5068_v45, %v4708_v28 }
 0x2cc   : > { %v3295_v30 = vpop.eup %3294  ;;  %v2232_v21 = vadd.f32 %v4657_v8, %v2062_v20  ;;  %v2063_v58 = vmul.f32 %v3293_v50, %v4523_v57  ;;  %3314 = vpow2.f32 %v2721_v18  ;;  %v2639_v43 = vmul.f32 -1.442695, %v4720_v56  ;;  %v5069_v8 = vld [vmem:[#allocation45_spill] sm:$0xff]  ;;  %2428 = vst [vmem:[%s4746_s7] sm:$0xff] %v2426_v27  ;;  %v5070_v18 = vld [vmem:[#allocation46_spill] sm:$0xff]  ;;  %v5074_v20 = vld [vmem:[#allocation20_spill] sm:$0xff] }
 0x2cd   : > { %v3297_v39 = vpop.eup %3296  ;;  %v2258_v48 = vadd.f32 %v4660_v60, %v2064_v4  ;;  %v2065_v12 = vmul.f32 %v3295_v30, %v4528_v19  ;;  %3316 = vpow2.f32 %v2720_v16  ;;  %v4743_v32 = vadd.f32 %v5069_v8, %v4708_v28 }
 0x2ce   : > { %v3299_v25 = vpop.eup %3298  ;;  %v2245_v24 = vadd.f32 %v4663_v9, %v2063_v58  ;;  %v2076_v35 = vmul.f32 %v3297_v39, %v4553_v31  ;;  %3318 = vpow2.f32 %v2722_v11  ;;  %v4752_v16 = vadd.f32 %v5070_v18, %v4700_v44  ;;  %v5076_v18 = vld [vmem:[#allocation13_spill] sm:$0xff] }
 0x2cf   : > { %v3301_v57 = vpop.eup %3300  ;;  %v2271_v60 = vadd.f32 %v2270_v40, %v2065_v12  ;;  %v2078_v19 = vmul.f32 %v3299_v25, %v4557_v59  ;;  %3320 = vpow2.f32 %v2733_v7  ;;  %v2667_v51 = vmul.f32 -1.442695, %v4725_v14  ;;  %v5071_v7 = vld [vmem:[#allocation19_spill] sm:$0xff] }
 0x2d0   : > { %v3303_v9 = vpop.eup %3302  ;;  %v2233_v31 = vadd.f32 %v2232_v21, %v2076_v35  ;;  %v2077_v11 = vmul.f32 %v3301_v57, %v4576_v26  ;;  %3322 = vpow2.f32 %v2735_v61  ;;  %v2640_v1 = vmul.f32 -1.442695, %v4732_v47  ;;  %v5072_v26 = vld [vmem:[#allocation9_spill] sm:$0xff] }
 0x2d1   : > { %v3305_v17 = vpop.eup %3304  ;;  %v2259_v49 = vadd.f32 %v2258_v48, %v2078_v19  ;;  %v2079_v34 = vmul.f32 %v3303_v9, %v4580_v6  ;;  %3324 = vpow2.f32 %v2734_v63  ;;  %v2668_v22 = vmul.f32 -1.442695, %v4743_v32  ;;  %v5073_v6 = vld [vmem:[#allocation10_spill] sm:$0xff] }
 0x2d2   : > { %v3307_v59 = vpop.eup %3306  ;;  %v2246_v37 = vadd.f32 %v2245_v24, %v2077_v11  ;;  %v2090_v38 = vmul.f32 %v3305_v17, %v5071_v7  ;;  %3326 = vpow2.f32 %v2736_v53  ;;  %v2653_v23 = vmul.f32 -1.442695, %v4752_v16 }
 0x2d3   : > { %v3309_v52 = vpop.eup %3308  ;;  %v2272_v29 = vadd.f32 %v2271_v60, %v2079_v34  ;;  %v2092_v61 = vmul.f32 %v3307_v59, %v5072_v26  ;;  %3328 = vpow2.f32 %v2639_v43  ;;  %v5075_v60 = vld [vmem:[#allocation47_spill] sm:$0xff]  ;;  %v4778_v9 = vadd.f32 %v5076_v18, %v4708_v28  ;;  %v5081_v26 = vld [vmem:[#allocation49_spill] sm:$0xff] }
 0x2d4   : > { %v3311_v10 = vpop.eup %3310  ;;  %v4762_v62 = vadd.f32 %v2233_v31, %v2090_v38  ;;  %v2091_v63 = vmul.f32 %v3309_v52, %v5073_v6  ;;  %3330 = vpow2.f32 %v2667_v51  ;;  %v4774_v19 = vadd.f32 %v5075_v60, %v4700_v44  ;;  %v5077_v51 = vld [vmem:[#allocation48_spill] sm:$0xff]  ;;  %v5080_v38 = vld [vmem:[#allocation18_spill] sm:$0xff] }
 0x2d5   : > { %v3313_v13 = vpop.eup %3312  ;;  %v4765_v5 = vadd.f32 %v2259_v49, %v2092_v61  ;;  %v2093_v53 = vmul.f32 %v3311_v10, %v5074_v20  ;;  %3332 = vpow2.f32 %v2640_v1  ;;  %v4782_v17 = vadd.f32 %v5077_v51, %v4708_v28  ;;  %v5078_v49 = vld [vmem:[#allocation15_spill] sm:$0xff]  ;;  %v5084_v60 = vld [vmem:[#allocation52_spill] sm:$0xff] }
 0x2d6   : > { %v3315_v15 = vpop.eup %3314  ;;  %v4768_v50 = vadd.f32 %v2246_v37, %v2091_v63  ;;  %v1768_v40 = vadd.f32 1.0, %v3313_v13  ;;  %3334 = vpow2.f32 %v2668_v22  ;;  %v4786_v34 = vadd.f32 %v5078_v49, %v4700_v44  ;;  %v5079_v37 = vld [vmem:[#allocation16_spill] sm:$0xff] }
 0x2d7   : > { %v3317_v4 = vpop.eup %3316  ;;  %v4770_v45 = vadd.f32 %v2272_v29, %v2093_v53  ;;  %v1770_v30 = vadd.f32 1.0, %v3315_v15  ;;  %3336 = vpow2.f32 %v2653_v23  ;;  %v4790_v7 = vadd.f32 %v5079_v37, %v4708_v28 }
 0x2d8   : > { %v3319_v21 = vpop.eup %3318  ;;  %3338 = vrcp.f32 %v1768_v40  ;;  %v1769_v58 = vadd.f32 1.0, %v3317_v4  ;;  %v4794_v22 = vadd.f32 %v5080_v38, %v4700_v44  ;;  %v4798_v61 = vadd.f32 %v5081_v26, %v4708_v28 }
 0x2d9   : > { %v3321_v27 = vpop.eup %3320  ;;  %3340 = vrcp.f32 %v1770_v30  ;;  %v1771_v39 = vadd.f32 1.0, %v3319_v21  ;;  %v2681_v6 = vmul.f32 -1.442695, %v4774_v19  ;;  %v2654_v63 = vmul.f32 -1.442695, %v4778_v9 }
 0x2da   : > { %v3323_v48 = vpop.eup %3322  ;;  %3342 = vrcp.f32 %v1769_v58  ;;  %v1782_v12 = vadd.f32 1.0, %v3321_v27  ;;  %v2682_v53 = vmul.f32 -1.442695, %v4782_v17  ;;  %v2695_v15 = vmul.f32 -1.442695, %v4786_v34 }
 0x2db   : > { %v3325_v43 = vpop.eup %3324  ;;  %3344 = vrcp.f32 %v1771_v39  ;;  %v1784_v25 = vadd.f32 1.0, %v3323_v48  ;;  %v2696_v30 = vmul.f32 -1.442695, %v4790_v7  ;;  %v2709_v21 = vmul.f32 -1.442695, %v4794_v22  ;;  %v5082_v48 = vld [vmem:[#allocation50_spill] sm:$0xff] }
 0x2dc   : > { %v3327_v24 = vpop.eup %3326  ;;  %3346 = vrcp.f32 %v1782_v12  ;;  %v1783_v35 = vadd.f32 1.0, %v3325_v43  ;;  %v2710_v39 = vmul.f32 -1.442695, %v4798_v61  ;;  %v4811_v12 = vadd.f32 %v5082_v48, %v4700_v44 }
 0x2dd   : > { %v3329_v8 = vpop.eup %3328  ;;  %3348 = vrcp.f32 %v1784_v25  ;;  %v1785_v57 = vadd.f32 1.0, %v3327_v24  ;;  %v5083_v24 = vld [vmem:[#allocation51_spill] sm:$0xff]  ;;  %v4823_v18 = vadd.f32 %v5084_v60, %v4700_v44 }
 0x2de   : > { %v3331_v31 = vpop.eup %3330  ;;  %3350 = vrcp.f32 %v1783_v35  ;;  %v1688_v11 = vadd.f32 1.0, %v3329_v8  ;;  %v4817_v35 = vadd.f32 %v5083_v24, %v4708_v28 }
 0x2df   : > { %v3333_v1 = vpop.eup %3332  ;;  %3352 = vrcp.f32 %v1785_v57  ;;  %v1716_v59 = vadd.f32 1.0, %v3331_v31 }
 0x2e0   : > { %v3335_v52 = vpop.eup %3334  ;;  %3354 = vrcp.f32 %v1688_v11  ;;  %v1689_v29 = vadd.f32 1.0, %v3333_v1  ;;  %v5085_v11 = vld [vmem:[#allocation53_spill] sm:$0xff]  ;;  %v2723_v1 = vmul.f32 -1.442695, %v4811_v12 }
 0x2e1   : > { %v3337_v23 = vpop.eup %3336  ;;  %3356 = vrcp.f32 %v1716_v59  ;;  %v1717_v10 = vadd.f32 1.0, %v3335_v52  ;;  %v4829_v51 = vadd.f32 %v5085_v11, %v4708_v28  ;;  %v2737_v52 = vmul.f32 -1.442695, %v4823_v18 }
 0x2e2   : > { %v3339_v13 = vpop.eup %3338  ;;  %3358 = vrcp.f32 %v1689_v29  ;;  %v1702_v20 = vadd.f32 1.0, %v3337_v23 }
 0x2e3   : > { %v3341_v40 = vpop.eup %3340  ;;  %v2104_v4 = vmul.f32 %v3339_v13, %v4614_v33  ;;  %3360 = vrcp.f32 %v1717_v10  ;;  %v2738_v26 = vmul.f32 -1.442695, %v4829_v51 }
 0x2e4   : > { %v3343_v58 = vpop.eup %3342  ;;  %v2106_v27 = vmul.f32 %v3341_v40, %v4620_v55  ;;  %3362 = vrcp.f32 %v1702_v20 }
 0x2e5   : > { %v3345_v43 = vpop.eup %3344  ;;  %v2235_v25 = vadd.f32 %v4762_v62, %v2104_v4  ;;  %v2105_v33 = vmul.f32 %v3343_v58, %v4624_v2  ;;  %3364 = vpow2.f32 %v2681_v6 }
 0x2e6   : > { %v3347_v8 = vpop.eup %3346  ;;  %v2261_v55 = vadd.f32 %v4765_v5, %v2106_v27  ;;  %v2107_v57 = vmul.f32 %v3345_v43, %v4672_v3  ;;  %3366 = vpow2.f32 %v2654_v63 }
 0x2e7   : > { %v3349_v31 = vpop.eup %3348  ;;  %v2248_v62 = vadd.f32 %v4768_v50, %v2105_v33  ;;  %v2118_v2 = vmul.f32 %v3347_v8, %v4681_v54  ;;  %3368 = vpow2.f32 %v2682_v53  ;;  %v2724_v54 = vmul.f32 -1.442695, %v4817_v35 }
 0x2e8   : > { %v3351_v49 = vpop.eup %3350  ;;  %v2274_v5 = vadd.f32 %v4770_v45, %v2107_v57  ;;  %v2120_v3 = vmul.f32 %v3349_v31, %v4686_v41  ;;  %3370 = vpow2.f32 %v2695_v15 }
 0x2e9   : > { %v3353_v44 = vpop.eup %3352  ;;  %v2236_v59 = vadd.f32 %v2235_v25, %v2118_v2  ;;  %v2119_v37 = vmul.f32 %v3351_v49, %v4690_v36  ;;  %3372 = vpow2.f32 %v2696_v30 }
 0x2ea   : > { %v3355_v50 = vpop.eup %3354  ;;  %v2262_v38 = vadd.f32 %v2261_v55, %v2120_v3  ;;  %v2121_v28 = vmul.f32 %v3353_v44, %v4695_v42  ;;  %3374 = vpow2.f32 %v2709_v21 }
 0x2eb   : > { %v3357_v45 = vpop.eup %3356  ;;  %v2237_v29 = vrot.slane %v2236_v59, 4  ;;  %v2249_v41 = vadd.f32 %v2248_v62, %v2119_v37  ;;  %3376 = vpow2.f32 %v2710_v39  ;;  %v2024_v15 = vmul.f32 %v3355_v50, %v4720_v56 }
 0x2ec   : > { %v4839_v23 = vpop.eup %3358  ;;  %v2263_v10 = vrot.slane %v2262_v38, 4  ;;  %v2275_v36 = vadd.f32 %v2274_v5, %v2121_v28  ;;  %3378 = vpow2.f32 %v2723_v1  ;;  %v2052_v48 = vmul.f32 %v3357_v45, %v4725_v14 }
 0x2ed   : > { %v4841_v6 = vpop.eup %3360  ;;  %v2238_v63 = vadd.f32 %v2237_v29, %v2236_v59  ;;  %v2250_v13 = vrot.slane %v2249_v41, 4  ;;  %3380 = vpow2.f32 %v2724_v54 }
 0x2ee   : > { %v3363_v42 = vpop.eup %3362  ;;  %v2264_v20 = vadd.f32 %v2263_v10, %v2262_v38  ;;  %v2276_v53 = vrot.slane %v2275_v36, 4  ;;  %3382 = vpow2.f32 %v2737_v52 }
 0x2ef   : > { %v3365_v40 = vpop.eup %3364  ;;  %v2239_v4 = vrot.slane %v2238_v63, 2  ;;  %v2251_v30 = vadd.f32 %v2250_v13, %v2249_v41  ;;  %v2038_v21 = vmul.f32 %v3363_v42, %v4752_v16  ;;  %3384 = vpow2.f32 %v2738_v26 }
 0x2f0   : > { %v3367_v58 = vpop.eup %3366  ;;  %v2265_v27 = vrot.slane %v2264_v20, 2  ;;  %v2277_v39 = vadd.f32 %v2276_v53, %v2275_v36  ;;  %v1730_v43 = vadd.f32 1.0, %v3365_v40 }
 0x2f1   : > { %v3369_v25 = vpop.eup %3368  ;;  %v2240_v33 = vadd.f32 %v2239_v4, %v2238_v63  ;;  %v2252_v24 = vrot.slane %v2251_v30, 2  ;;  %v2282_v8 = vadd.f32 %v2038_v21, %v2024_v15  ;;  %v1703_v55 = vadd.f32 1.0, %v3367_v58 }
 0x2f2   : > { %v3371_v57 = vpop.eup %3370  ;;  %v2266_v56 = vadd.f32 %v2265_v27, %v2264_v20  ;;  %v2278_v60 = vrot.slane %v2277_v39, 2  ;;  %3386 = vrcp.f32 %v1730_v43  ;;  %v1731_v31 = vadd.f32 1.0, %v3369_v25 }
 0x2f3   : > { %v3373_v62 = vpop.eup %3372  ;;  %v2241_v2 = vrot.slane %v2240_v33, 1  ;;  %v2253_v16 = vadd.f32 %v2252_v24, %v2251_v30  ;;  %v2283_v11 = vadd.f32 %v2282_v8, %v2052_v48  ;;  %3388 = vrcp.f32 %v1703_v55 }
 0x2f4   : > { %v3375_v49 = vpop.eup %3374  ;;  %v2267_v5 = vrot.slane %v2266_v56, 1  ;;  %v2279_v3 = vadd.f32 %v2278_v60, %v2277_v39  ;;  %3390 = vrcp.f32 %v1731_v31  ;;  %v1744_v14 = vadd.f32 1.0, %v3371_v57 }
 0x2f5   : > { %v3377_v1 = vpop.eup %3376  ;;  %v2242_v44 = vadd.f32 %v2241_v2, %v2240_v33  ;;  %v2254_v59 = vrot.slane %v2253_v16, 1  ;;  %v1745_v37 = vadd.f32 1.0, %v3373_v62  ;;  %v1758_v54 = vadd.f32 1.0, %v3375_v49 }
 0x2f6   : > { %v3379_v50 = vpop.eup %3378  ;;  %v2268_v38 = vadd.f32 %v2267_v5, %v2266_v56  ;;  %v2280_v28 = vrot.slane %v2279_v3, 1  ;;  %3392 = vrcp.f32 %v1744_v14  ;;  %v1759_v52 = vadd.f32 1.0, %v3377_v1 }
 0x2f7   : > { %v3381_v45 = vpop.eup %3380  ;;  %v2255_v29 = vadd.f32 %v2254_v59, %v2253_v16  ;;  %3394 = vrcp.f32 %v1745_v37  ;;  %v1772_v41 = vadd.f32 1.0, %v3379_v50  ;;  %v2025_v39 = vmul.f32 %v4839_v23, %v4732_v47 }
 0x2f8   : > { %v3383_v26 = vpop.eup %3382  ;;  %v2281_v10 = vadd.f32 %v2280_v28, %v2279_v3  ;;  %3396 = vrcp.f32 %v1758_v54  ;;  %v1773_v36 = vadd.f32 1.0, %v3381_v45  ;;  %v2053_v33 = vmul.f32 %v4841_v6, %v4743_v32 }
 0x2f9   : > { %v3385_v63 = vpop.eup %3384  ;;  %v2371_v13 = vcombine.low %v2242_v44, %v2255_v29  ;;  %3398 = vrcp.f32 %v1759_v52  ;;  %v1786_v42 = vadd.f32 1.0, %v3383_v26 }
 0x2fa   : > { %v2372_v20 = vcombine.low %v2268_v38, %v2281_v10  ;;  %3400 = vrcp.f32 %v1772_v41  ;;  %v1787_v53 = vadd.f32 1.0, %v3385_v63  ;;  %v2125_v10 = vld [vmem:[#allocation2 + $0x8] sm:$0x3f] }
 0x2fb   : > { %v2380_v15 = vrot.slane %v2371_v13, %v4166_v46  ;;  %3402 = vrcp.f32 %v1773_v36 }
 0x2fc   : > { %v3387_v40 = vpop.eup %3386  ;;  %v2387_v4 = vrot.slane %v2372_v20, %v4166_v46  ;;  %3404 = vrcp.f32 %v1786_v42 }
 0x2fd   : > { %v3389_v30 = vpop.eup %3388  ;;  %v2066_v21 = vmul.f32 %v3387_v40, %v4774_v19  ;;  %3406 = vrcp.f32 %v1787_v53 }
 0x2fe   : > { %v3391_v58 = vpop.eup %3390  ;;  %v2395_v27 = vcombine.low %v2380_v15, %v2387_v4  ;;  %v2039_v48 = vmul.f32 %v3389_v30, %v4778_v9 }
 0x2ff   : > { %v2284_v43 = vadd.f32 %v2283_v11, %v2066_v21  ;;  %v2067_v19 = vmul.f32 %v3391_v58, %v4782_v17 }
 0x300   : > { %v3393_v25 = vpop.eup %3392  ;;  %v2295_v24 = vadd.f32 %v2039_v48, %v2025_v39  ;;  %v2402_v41 = vrot.slane %v2395_v27, %v4166_v46 }
 0x301   : > { %v3395_v8 = vpop.eup %3394  ;;  %v2080_v55 = vmul.f32 %v3393_v25, %v4786_v34 }
 0x302   : > { %v3397_v57 = vpop.eup %3396  ;;  %v2296_v56 = vadd.f32 %v2295_v24, %v2053_v33  ;;  %v2081_v60 = vmul.f32 %v3395_v8, %v4790_v7 }
 0x303   : > { %v3399_v31 = vpop.eup %3398  ;;  %v2285_v62 = vadd.f32 %v2284_v43, %v2080_v55  ;;  %v2094_v47 = vmul.f32 %v3397_v57, %v4794_v22 }
 0x304   : > { %v3401_v9 = vpop.eup %3400  ;;  %v2297_v23 = vadd.f32 %v2296_v56, %v2067_v19  ;;  %v2095_v2 = vmul.f32 %v3399_v31, %v4798_v61 }
 0x305   : > { %v3403_v16 = vpop.eup %3402  ;;  %v2286_v32 = vadd.f32 %v2285_v62, %v2094_v47  ;;  %v2108_v6 = vmul.f32 %v3401_v9, %v4811_v12 }
 0x306   : > { %v3405_v11 = vpop.eup %3404  ;;  %v2298_v34 = vadd.f32 %v2297_v23, %v2081_v60  ;;  %v2109_v49 = vmul.f32 %v3403_v16, %v4817_v35 }
 0x307   : > { %v3407_v17 = vpop.eup %3406  ;;  %v2287_v5 = vadd.f32 %v2286_v32, %v2108_v6  ;;  %v2122_v7 = vmul.f32 %v3405_v11, %v4823_v18 }
 0x308   : > { %v2299_v3 = vadd.f32 %v2298_v34, %v2095_v2  ;;  %v2123_v14 = vmul.f32 %v3407_v17, %v4829_v51 }
 0x309   : > { %v2288_v22 = vadd.f32 %v2287_v5, %v2122_v7 }
 0x30a   : > { %v2300_v1 = vadd.f32 %v2299_v3, %v2109_v49 }
 0x30b   : > { %v2289_v44 = vrot.slane %v2288_v22, 4 }
 0x30c   : > { %v2301_v59 = vadd.f32 %v2300_v1, %v2123_v14 }
 0x30d   : > { %v2290_v61 = vadd.f32 %v2289_v44, %v2288_v22 }
 0x30e   : > { %v2302_v37 = vrot.slane %v2301_v59, 4 }
 0x30f   : > { %v2291_v54 = vrot.slane %v2290_v61, 2 }
 0x310   : > { %v2303_v50 = vadd.f32 %v2302_v37, %v2301_v59 }
 0x311   : > { %v2292_v12 = vadd.f32 %v2291_v54, %v2290_v61 }
 0x312   : > { %v2304_v38 = vrot.slane %v2303_v50, 2 }
 0x313   : > { %v2293_v35 = vrot.slane %v2292_v12, 1 }
 0x314   : > { %v2305_v28 = vadd.f32 %v2304_v38, %v2303_v50 }
 0x315   : > { %v2294_v52 = vadd.f32 %v2293_v35, %v2292_v12 }
 0x316   : > { %v2306_v45 = vrot.slane %v2305_v28, 1 }
 0x318   : > { %v2307_v18 = vadd.f32 %v2306_v45, %v2305_v28 }
 0x31a   : > { %v2373_v51 = vcombine.low %v2294_v52, %v2307_v18 }
 0x31c   : > { %v2394_v29 = vrot.slane %v2373_v51, %v4166_v46 }
 0x31e   : > { %v2409_v26 = vrot.slane %v2394_v29, %v4166_v46 }
 0x320   : > { %v2410_v36 = vcombine.low %v2402_v41, %v2409_v26 }
 0x322   : > { %v2414_v63 = vadd.f32 %v2410_v36, %v2125_v10 }
 0x324   : > { %2420 = vst.msk [vmem:[#allocation2 + $0x8] sm:$0x3f] %vm4640_vm5, %v2414_v63 }
 0x32b   : > { %v2425_v13 = vld [vmem:[#allocation2 + $0x8] sm:$0x3f] }
 0x32c   : > { %v2427_v42 = vmul.f32 0.015625, %v2425_v13 }
 0x32e   : > { %2429 = vst.msk [vmem:[%s4746_s7 + $0x8] sm:$0x3f] %vm4640_vm5, %v2427_v42 }
 0x32f   : > { %3449 = shalt.err (!%p3446_p6)
}
 0x330   : > { %s3450_s14 = scalar_lea.hbm %s4873_s27, 224  ;;  %s3454_s16 = scalar_lea.hbm %s4930_s5, 448 }
 0x331   : > { %p3451_p7 = scmp.ne.s32.totalorder %s4873_s27, %s3450_s14  ;;  %p3455_p0 = scmp.lt.u32.totalorder %s4873_s27, %s4930_s5 }
 0x332   : > { %p3456_p2 = scmp.lt.u32.totalorder %s3454_s16, %s3450_s14  ;;  %p3458_p8 = scmp.lt.u32.totalorder %s3450_s14, %s4873_s27 }
 0x333   : > { %p3452_p9 = pnand %p3451_p7, %p5086_p10 }
 0x334   : > { %p3457_p4 = por %p3456_p2, %p3455_p0 }
 0x335   : > { %p3453_p12 = pneg %p3452_p9 }
 0x336   : > { %p3459_p11 = por %p3458_p8, %p3457_p4 }
 0x338   : > { %p3460_p13 = pnand %p3459_p11, %p3453_p12 }
 0x33a   : > { %3463 = shalt.err (!%p3460_p13)
}
 0x33b   : > { %2797 = dma.vmem_to_hbm [thread:$0]  (%p5086_p10), %s4875_s24, 224, %s4873_s27, %s2431_s29  }
 0x33c PF: > { %p2809_p1 = scmp.ge.s32.totalorder %s3518_s23, 2  ;;  %s2457_s17 = sand.u32 1, %s3498_s18  }
 0x33d   : > { %p5087_p3 = scmp.ne.s32.totalorder %s4952_s30, 0  ;;  %s2458_s8 = scalar_lea.sflag [#allocation5], %s2457_s17 }
 0x33f   : > { %p2804_p5 = pnand %p2809_p1, %p5087_p3 }
 0x341   : > { %3493 = dma.done.wait (!%p2804_p5), %s2458_s8, 224  }
 0x342   : > { %3495 = vsyncadd (!%p2804_p5), %s2458_s8, 4294967072  ;;  %s19_s23 = sadd.s32 1, %s3518_s23   ;;  %s5088_s18 = smov %s3502_s19 }
 0x343   : > { %p16_p6 = scmp.ge.s32.totalorder %s19_s23, 4   ;;  %s5089_s19 = smov %s3506_s20 }
 0x344   : > { %s5090_s20 = smov %s3611_s6  ;;  %s5091_s21 = smov %s3514_s22 }
 0x345   : > { %s5092_s22 = smov %s5094_s26  ;;  %18 = sbr.rel (!%p16_p6) target bundleno = 5 (0x5), region = 88 }
 0x34c   :  { %2463 = vsyncpa [#allocation4], 1 }
 0x34d   :  { %2465 = vsyncpa [#allocation4 + $0x1], 1 }
 0x34e   :  { %2466 = vsyncpa [#allocation5], 1 }
 0x34f   :  { %2468 = vsyncpa [#allocation5 + $0x1], 1 }

</bundles_post_ra>
